<compile_context>
chip_gen: v5e
topology: v5e:2x2
jax: 0.10.0
libtpu: 0.0.40
codegen_flags: <defaults>
</compile_context>

<pallas_src>
import functools

import jax
import jax.numpy as jnp
from jax.experimental import pallas as pl
from jax.experimental.pallas import tpu as pltpu


def _relu_conv_gn_kernel(x_ref, w_ref, g_ref, b_ref, o_ref, *, K, stride, Ho, Wo, eps):
    """Fused ReLU + Conv2d + GroupNorm(1) for ONE batch element.

    x_ref: (Cin, Hp, Wp)    zero-padded NCHW input (batch dim squeezed by BlockSpec)
    w_ref: (Cout, K*K*Cin)  conv weight, axis 1 ordered as (kh, kw, cin)
    g_ref: (Cout, 1)        GroupNorm gamma
    b_ref: (Cout, 1)        GroupNorm beta
    o_ref: (Cout, Ho*Wo)    NCHW-flattened output (lane-dense last dim)
    """
    Cin = x_ref.shape[0]

    # ReLU (padding is zeros, so ReLU-after-pad == pad-after-ReLU).
    x = jnp.maximum(x_ref[...], 0.0)                           # (Cin, Hp, Wp) f32

    # im2col: build the (K*K*Cin, Ho*Wo) patch slab once, then ONE MXU matmul
    # with contraction dim K*K*Cin instead of K*K dots with contraction Cin.
    cols = []
    for kh in range(K):
        for kw in range(K):
            win = x[:, kh:kh + Ho * stride:stride, kw:kw + Wo * stride:stride]
            cols.append(win.reshape(Cin, Ho * Wo))
    patches = jnp.concatenate(cols, axis=0)                    # (K*K*Cin, Ho*Wo)

    acc = jnp.dot(w_ref[...], patches,
                  preferred_element_type=jnp.float32)          # (Cout, Ho*Wo)

    # GroupNorm(num_groups=1): one-pass stats over the whole (Cout, Ho*Wo) sample.
    inv_n = 1.0 / float(acc.shape[0] * acc.shape[1])
    mean = jnp.sum(acc) * inv_n
    var = jnp.sum(acc * acc) * inv_n - mean * mean
    inv_std = jax.lax.rsqrt(var + eps)
    y = (acc - mean) * inv_std
    y = y * g_ref[...] + b_ref[...]                            # (Cout,1) bcast over lanes

    o_ref[...] = y.astype(o_ref.dtype)                         # lane-dense store


def relu_conv_bn(x_nchw, weight_oihw, gamma, beta, *, stride=1, padding=1, eps=1e-5):
    """Pallas implementation of ReLUConvBN.forward.

    x_nchw:      (N, Cin, H, W)    float32
    weight_oihw: (Cout, Cin, K, K) float32  (Conv2d weight, bias=False)
    gamma,beta:  (Cout,)           GroupNorm affine params
    returns:     (N, Cout, Ho, Wo)
    """
    N, Cin, H, W = x_nchw.shape
    Cout, _, K, _ = weight_oihw.shape
    Ho = (H + 2 * padding - K) // stride + 1
    Wo = (W + 2 * padding - K) // stride + 1
    Hp, Wp = H + 2 * padding, W + 2 * padding

    # Glue: zero padding (input stays NCHW) + weight flatten to (Cout, K*K*Cin)
    # with axis-1 order (kh, kw, cin) matching the in-kernel im2col ordering.
    x = jnp.pad(x_nchw, ((0, 0), (0, 0), (padding, padding), (padding, padding)))
    w = jnp.transpose(weight_oihw, (0, 2, 3, 1)).reshape(Cout, K * K * Cin)
    g = gamma.reshape(Cout, 1)
    b = beta.reshape(Cout, 1)

    kernel = functools.partial(
        _relu_conv_gn_kernel, K=K, stride=stride, Ho=Ho, Wo=Wo, eps=eps
    )

    out_flat = pl.pallas_call(
        kernel,
        out_shape=jax.ShapeDtypeStruct((N, Cout, Ho * Wo), x_nchw.dtype),
        grid=(N,),
        in_specs=[
            pl.BlockSpec((None, Cin, Hp, Wp), lambda n: (n, 0, 0, 0)),  # per-batch block
            pl.BlockSpec((Cout, K * K * Cin), lambda n: (0, 0)),        # full weights
            pl.BlockSpec((Cout, 1), lambda n: (0, 0)),                  # gamma
            pl.BlockSpec((Cout, 1), lambda n: (0, 0)),                  # beta
        ],
        out_specs=pl.BlockSpec((None, Cout, Ho * Wo), lambda n: (n, 0, 0)),
        compiler_params=pltpu.CompilerParams(dimension_semantics=("parallel",)),
    )(x, w, g, b)

    # Free reshape: (N, Cout, Ho*Wo) is already NCHW-contiguous.
    return out_flat.reshape(N, Cout, Ho, Wo)


def _reference(x, weight, gamma, beta, stride, padding, eps):
    """Pure-JAX reference matching the PyTorch module semantics."""
    xr = jax.nn.relu(x)
    y = jax.lax.conv_general_dilated(
        xr, weight, (stride, stride),
        [(padding, padding), (padding, padding)],
        dimension_numbers=("NCHW", "OIHW", "NCHW"),
    )
    mean = jnp.mean(y, axis=(1, 2, 3), keepdims=True)
    var = jnp.mean((y - mean) ** 2, axis=(1, 2, 3), keepdims=True)
    yn = (y - mean) * jax.lax.rsqrt(var + eps)
    return yn * gamma.reshape(1, -1, 1, 1) + beta.reshape(1, -1, 1, 1)


if __name__ == "__main__":
    # Module config: ReLUConvBN(in_channels=4, out_channels=8, kernel_size=3,
    #                           stride=1, padding=1, affine=True)
    N, Cin, Cout, H, W, K = 2, 4, 8, 16, 16, 3
    stride, padding, eps = 1, 1, 1e-5

    key = jax.random.PRNGKey(0)
    k1, k2, k3, k4 = jax.random.split(key, 4)
    x = jax.random.normal(k1, (N, Cin, H, W), jnp.float32)
    weight = 0.1 * jax.random.normal(k2, (Cout, Cin, K, K), jnp.float32)
    gamma = 1.0 + 0.1 * jax.random.normal(k3, (Cout,), jnp.float32)
    beta = 0.1 * jax.random.normal(k4, (Cout,), jnp.float32)

    out = relu_conv_bn(x, weight, gamma, beta, stride=stride, padding=padding, eps=eps)
    out = jax.block_until_ready(out)

    ref = _reference(x, weight, gamma, beta, stride, padding, eps)
    assert out.shape == (N, Cout, H, W), out.shape
    assert jnp.allclose(out, ref, atol=1e-4, rtol=1e-4), float(jnp.max(jnp.abs(out - ref)))

    print("KERNEL_OK")
</pallas_src>

<mosaic_0001>
module attributes {stable_mosaic.version = 11 : i64} {
  func.func @_relu_conv_gn_kernel(%arg0: i32, %arg1: memref<1x4x18x18xf32, #tpu.memory_space<vmem>>, %arg2: memref<8x36xf32, #tpu.memory_space<vmem>>, %arg3: memref<8x1xf32, #tpu.memory_space<vmem>>, %arg4: memref<8x1xf32, #tpu.memory_space<vmem>>, %arg5: memref<1x8x256xf32, #tpu.memory_space<vmem>>) attributes {dimension_semantics = [#tpu.dimension_semantics<parallel>], iteration_bounds = array<i64: 2>, scalar_prefetch = 0 : i64, scratch_operands = 0 : i64, tpu.core_type = #tpu.core_type<tc>, window_params = [{transform_indices = @transform_0, window_bounds = array<i64: 1, 4, 18, 18>}, {pipeline_mode = #tpu.pipeline_mode<synchronous>, transform_indices = @transform_1, window_bounds = array<i64: 8, 36>}, {pipeline_mode = #tpu.pipeline_mode<synchronous>, transform_indices = @transform_2, window_bounds = array<i64: 8, 1>}, {pipeline_mode = #tpu.pipeline_mode<synchronous>, transform_indices = @transform_3, window_bounds = array<i64: 8, 1>}, {transform_indices = @transform_4, window_bounds = array<i64: 1, 8, 256>}]} {
    %c0 = arith.constant 0 : index
    %c0_0 = arith.constant 0 : index
    %c0_1 = arith.constant 0 : index
    %c0_2 = arith.constant 0 : index
    %0 = vector.load %arg1[%c0, %c0_0, %c0_1, %c0_2] : memref<1x4x18x18xf32, #tpu.memory_space<vmem>>, vector<1x4x18x18xf32>
    %1 = vector.shape_cast %0 : vector<1x4x18x18xf32> to vector<4x18x18xf32>
    %cst = arith.constant 0.000000e+00 : f32
    %2 = vector.broadcast %cst : f32 to vector<4x18x18xf32>
    %3 = arith.maximumf %1, %2 : vector<4x18x18xf32>
    %4 = vector.extract_strided_slice %3 {offsets = [0, 0, 0], sizes = [4, 16, 16], strides = [1, 1, 1]} : vector<4x18x18xf32> to vector<4x16x16xf32>
    %5 = vector.shape_cast %4 : vector<4x16x16xf32> to vector<4x256xf32>
    %6 = vector.extract_strided_slice %3 {offsets = [0, 0, 1], sizes = [4, 16, 16], strides = [1, 1, 1]} : vector<4x18x18xf32> to vector<4x16x16xf32>
    %7 = vector.shape_cast %6 : vector<4x16x16xf32> to vector<4x256xf32>
    %8 = vector.extract_strided_slice %3 {offsets = [0, 0, 2], sizes = [4, 16, 16], strides = [1, 1, 1]} : vector<4x18x18xf32> to vector<4x16x16xf32>
    %9 = vector.shape_cast %8 : vector<4x16x16xf32> to vector<4x256xf32>
    %10 = vector.extract_strided_slice %3 {offsets = [0, 1, 0], sizes = [4, 16, 16], strides = [1, 1, 1]} : vector<4x18x18xf32> to vector<4x16x16xf32>
    %11 = vector.shape_cast %10 : vector<4x16x16xf32> to vector<4x256xf32>
    %12 = vector.extract_strided_slice %3 {offsets = [0, 1, 1], sizes = [4, 16, 16], strides = [1, 1, 1]} : vector<4x18x18xf32> to vector<4x16x16xf32>
    %13 = vector.shape_cast %12 : vector<4x16x16xf32> to vector<4x256xf32>
    %14 = vector.extract_strided_slice %3 {offsets = [0, 1, 2], sizes = [4, 16, 16], strides = [1, 1, 1]} : vector<4x18x18xf32> to vector<4x16x16xf32>
    %15 = vector.shape_cast %14 : vector<4x16x16xf32> to vector<4x256xf32>
    %16 = vector.extract_strided_slice %3 {offsets = [0, 2, 0], sizes = [4, 16, 16], strides = [1, 1, 1]} : vector<4x18x18xf32> to vector<4x16x16xf32>
    %17 = vector.shape_cast %16 : vector<4x16x16xf32> to vector<4x256xf32>
    %18 = vector.extract_strided_slice %3 {offsets = [0, 2, 1], sizes = [4, 16, 16], strides = [1, 1, 1]} : vector<4x18x18xf32> to vector<4x16x16xf32>
    %19 = vector.shape_cast %18 : vector<4x16x16xf32> to vector<4x256xf32>
    %20 = vector.extract_strided_slice %3 {offsets = [0, 2, 2], sizes = [4, 16, 16], strides = [1, 1, 1]} : vector<4x18x18xf32> to vector<4x16x16xf32>
    %21 = vector.shape_cast %20 : vector<4x16x16xf32> to vector<4x256xf32>
    %22 = tpu.concatenate %5, %7, %9, %11, %13, %15, %17, %19, %21 in 0 : vector<4x256xf32>, vector<4x256xf32>, vector<4x256xf32>, vector<4x256xf32>, vector<4x256xf32>, vector<4x256xf32>, vector<4x256xf32>, vector<4x256xf32>, vector<4x256xf32> -> vector<36x256xf32>
    %c0_3 = arith.constant 0 : index
    %c0_4 = arith.constant 0 : index
    %23 = vector.load %arg2[%c0_3, %c0_4] : memref<8x36xf32, #tpu.memory_space<vmem>>, vector<8x36xf32>
    %cst_5 = arith.constant dense<0.000000e+00> : vector<8x256xf32>
    %24 = tpu.matmul %23, %22, %cst_5 {dimension_numbers = #tpu.dot_dimension_numbers<[1], [0], [0], [1], [0, 0, 1, 1], [], []>} : vector<8x36xf32>, vector<36x256xf32>, vector<8x256xf32> -> vector<8x256xf32>
    %25 = vector.shape_cast %24 : vector<8x256xf32> to vector<1x8x256xf32>
    %cst_6 = arith.constant dense<0.000000e+00> : vector<1xf32>
    %26 = vector.multi_reduction <add>, %25, %cst_6 [1, 2] : vector<1x8x256xf32> to vector<1xf32>
    %27 = vector.shape_cast %26 : vector<1xf32> to vector<1x1x1xf32>
    %28 = vector.extract %27[0, 0, 0] : f32 from vector<1x1x1xf32>
    %cst_7 = arith.constant 4.8828125E-4 : f32
    %29 = arith.mulf %28, %cst_7 : f32
    %30 = arith.mulf %24, %24 : vector<8x256xf32>
    %31 = vector.shape_cast %30 : vector<8x256xf32> to vector<1x8x256xf32>
    %cst_8 = arith.constant dense<0.000000e+00> : vector<1xf32>
    %32 = vector.multi_reduction <add>, %31, %cst_8 [1, 2] : vector<1x8x256xf32> to vector<1xf32>
    %33 = vector.shape_cast %32 : vector<1xf32> to vector<1x1x1xf32>
    %34 = vector.extract %33[0, 0, 0] : f32 from vector<1x1x1xf32>
    %cst_9 = arith.constant 4.8828125E-4 : f32
    %35 = arith.mulf %34, %cst_9 : f32
    %36 = arith.mulf %29, %29 : f32
    %37 = arith.subf %35, %36 : f32
    %cst_10 = arith.constant 9.99999974E-6 : f32
    %38 = arith.addf %37, %cst_10 : f32
    %39 = math.rsqrt %38 : f32
    %40 = vector.broadcast %29 : f32 to vector<8x256xf32>
    %41 = arith.subf %24, %40 : vector<8x256xf32>
    %42 = vector.broadcast %39 : f32 to vector<8x256xf32>
    %43 = arith.mulf %41, %42 : vector<8x256xf32>
    %c0_11 = arith.constant 0 : index
    %c0_12 = arith.constant 0 : index
    %44 = vector.load %arg3[%c0_11, %c0_12] : memref<8x1xf32, #tpu.memory_space<vmem>>, vector<8x1xf32>
    %45 = vector.broadcast %44 : vector<8x1xf32> to vector<8x256xf32>
    %46 = arith.mulf %43, %45 : vector<8x256xf32>
    %c0_13 = arith.constant 0 : index
    %c0_14 = arith.constant 0 : index
    %47 = vector.load %arg4[%c0_13, %c0_14] : memref<8x1xf32, #tpu.memory_space<vmem>>, vector<8x1xf32>
    %48 = vector.broadcast %47 : vector<8x1xf32> to vector<8x256xf32>
    %49 = arith.addf %46, %48 : vector<8x256xf32>
    %c0_15 = arith.constant 0 : index
    %c0_16 = arith.constant 0 : index
    %c0_17 = arith.constant 0 : index
    %50 = vector.load %arg5[%c0_15, %c0_16, %c0_17] : memref<1x8x256xf32, #tpu.memory_space<vmem>>, vector<1x8x256xf32>
    %51 = vector.shape_cast %50 : vector<1x8x256xf32> to vector<8x256xf32>
    %52 = vector.shape_cast %49 : vector<8x256xf32> to vector<1x8x256xf32>
    tpu.vector_store %arg5[%c0_15, %c0_16, %c0_17], %52 {strides = array<i32>} : memref<1x8x256xf32, #tpu.memory_space<vmem>>, vector<1x8x256xf32>,
    return
  }
  func.func @transform_0(%arg0: i32) -> (i32, i32, i32, i32) {
    %c0_i32 = arith.constant 0 : i32
    %c0_i32_0 = arith.constant 0 : i32
    %c0_i32_1 = arith.constant 0 : i32
    %c0_i32_2 = arith.constant 0 : i32
    return %arg0, %c0_i32, %c0_i32_0, %c0_i32_1 : i32, i32, i32, i32
  }
  func.func @transform_1(%arg0: i32) -> (i32, i32) {
    %c0_i32 = arith.constant 0 : i32
    %c0_i32_0 = arith.constant 0 : i32
    %c0_i32_1 = arith.constant 0 : i32
    return %c0_i32, %c0_i32_0 : i32, i32
  }
  func.func @transform_2(%arg0: i32) -> (i32, i32) {
    %c0_i32 = arith.constant 0 : i32
    %c0_i32_0 = arith.constant 0 : i32
    %c0_i32_1 = arith.constant 0 : i32
    return %c0_i32, %c0_i32_0 : i32, i32
  }
  func.func @transform_3(%arg0: i32) -> (i32, i32) {
    %c0_i32 = arith.constant 0 : i32
    %c0_i32_0 = arith.constant 0 : i32
    %c0_i32_1 = arith.constant 0 : i32
    return %c0_i32, %c0_i32_0 : i32, i32
  }
  func.func @transform_4(%arg0: i32) -> (i32, i32, i32) {
    %c0_i32 = arith.constant 0 : i32
    %c0_i32_0 = arith.constant 0 : i32
    %c0_i32_1 = arith.constant 0 : i32
    return %arg0, %c0_i32, %c0_i32_0 : i32, i32, i32
  }
}

</mosaic_0001>

<bundles_post_ra>
// kernel: tpu_custom_call.1
= control target key start
LH: loop header
LB: loop body
LE: loop exit
PB: predicated region body
PF: predicated region fallthrough
CT: control target
= control target key end

     0   :  { %9 = vsyncpa [#allocation3], 0  ;;  %s4631_s0 = inlined_call_operand.vmem [shape: f32[2,4,18,18], index: 0, kind: input, shape index: {}]   ;;  %s4632_s1 = inlined_call_operand.vmem [shape: f32[8,36], index: 1, kind: input, shape index: {}]   ;;  %s4633_s2 = inlined_call_operand.vmem [shape: f32[8,1], index: 2, kind: input, shape index: {}]   ;;  %s4634_s3 = inlined_call_operand.vmem [shape: f32[8,1], index: 3, kind: input, shape index: {}]   ;;  %s4635_s4 = inlined_call_operand.hbm [shape: f32[2,8,256], index: 4, kind: output, shape index: {}]  }
   0x1   :  { %11 = vsyncpa [#allocation3 + $0x1], 0  ;;  %s2851_s15 = smov 0   ;;  %s2853_s16 = smov 0  }
   0x2   :  { %s2855_s17 = smov 0   ;;  %s2857_s18 = smov 0  }
   0x3 LB: > { %s2872_s19 = sadd.s32 4294967295, %s2812_s18   ;;  %s2303_s20 = sadd.s32 4294967294, %s2812_s18   ;;  %s2812_s18 = sphi %s2857_s18, %s4846_s18   ;;  %s2808_s17 = sphi %s2855_s17, %s4845_s17   ;;  %s2804_s16 = sphi %s2853_s16, %s4844_s16   ;;  %s2800_s15 = sphi %s2851_s15, %s4843_s15  }
   0x4   : > { %s2876_s21 = sadd.s32 1, %s2812_s18   ;;  %s113_s22 = sadd.s32 1, %s2808_s17 }
   0x5   : > { %s110_s23 = ssub.s32 %s2812_s18, %s2876_s21  ;;  %p123_p0 = scmp.ne.s32.totalorder %s2808_s17, %s2804_s16 }
   0x6   : > { %p111_p1 = scmp.eq.s32.totalorder %s110_s23, 0  ;;  %p124_p2 = scmp.eq.s32.totalorder %s2872_s19, 1 }
   0x7   : > { %p129_p3 = scmp.ne.s32.totalorder %s2804_s16, %s2800_s15  ;;  %p130_p4 = scmp.eq.s32.totalorder %s2303_s20, 1 }
   0x8   : > { %s2887_s24 = scalar_select %p111_p1, %s2808_s17, %s113_s22  }
   0x9   : > { %p2889_p5 = por %p124_p2, %p123_p0  ;;  %p2893_p6 = por %p130_p4, %p129_p3 }
   0xa   : > { %p2306_p7 = scmp.ge.s32.totalorder %s2812_s18, 1  ;;  %p165_p8 = scmp.lt.s32.totalorder %s2812_s18, 3 }
   0xc   : > { %p166_p9 = pnand %p2306_p7, %p165_p8 }
   0xe   : > { %169 = sbr.rel (%p166_p9) target bundleno = 917 (0x395), region = 36 }
  0x13   : > { %p191_p10 = scmp.lt.s32.totalorder %s2872_s19, 1  ;;  %v2814_v0 = vmov 1983009808   ;;  %vm221_vm0 = vcmask 1047556   ;;  %v2815_v11 = vmov 1934713408  }
  0x14   : > { %v226_v1 = vunpack.c.l.s4 %v2814_v0  ;;  %v250_v12 = vunpack.c.l.s4 %v2815_v11  ;;  %s2816_s6 = smov 127   ;;  %s2817_s7 = smov 64   ;;  %vm1457_vm1 = vcmask 1045504   ;;  %vm834_vm2 = vcmask 1046528  }
  0x15   : > { %s192_s27 = scalar_select %p191_p10, %s2872_s19, 1  ;;  %vm389_vm3 = vcmask 130048   ;;  %vm391_vm4 = vcmask 261120   ;;  %vm393_vm5 = vcmask 392192   ;;  %vm395_vm6 = vcmask 523264  }
  0x16   : > { %v2926_v18 = vunpack.c.0.s8 %v226_v1  ;;  %v2960_v39 = vunpack.c.0.s8 %v250_v12  ;;  %s2818_s8 = smov 32   ;;  %s2819_s9 = smov 48   ;;  %vm397_vm7 = vcmask 654336   ;;  %vm399_vm8 = vcmask 785408  }
  0x17   : > { %s2319_s28 = smul.u32 96, %s192_s27  ;;  %s2820_s10 = smov 16   ;;  %vm401_vm9 = vcmask 916480   ;;  %vm2104_vm10 = vcmask 1043456   ;;  %vm2114_vm11 = vcmask 293888  }
  0x18   : > { %s2821_s11 = smov 96   ;;  %s2822_s12 = smov 112  }
  0x19   : > { %s2904_s5 = scalar_lea.vmem %s4631_s0, %s2319_s28  ;;  %s2823_s13 = smov 80  }
  0x1a   : > { %v196_v2 = vld [vmem:[%s2904_s5] sm:$0xff]  ;;  %v197_v3 = vld [vmem:[%s2904_s5 + $0x8] sm:$0xff]  ;;  %v199_v4 = vld [vmem:[%s2904_s5 + $0x18] sm:$0xff]  ;;  %s2824_s14 = smov 126  }
  0x1b   : > { %v2909_v5 = vmax.f32 %v196_v2, 0.0  ;;  %v2911_v6 = vmax.f32 %v197_v3, 0.0  ;;  %v200_v7 = vld [vmem:[%s2904_s5 + $0x20] sm:$0xff]  ;;  %v202_v8 = vld [vmem:[%s2904_s5 + $0x30] sm:$0xff]  ;;  %v203_v9 = vld [vmem:[%s2904_s5 + $0x38] sm:$0xff]  ;;  %v2916_v10 = vmax.f32 %v199_v4, 0.0 }
  0x1c   : > { %v205_v13 = vld [vmem:[%s2904_s5 + $0x48] sm:$0xff]  ;;  %v206_v14 = vld [vmem:[%s2904_s5 + $0x50] sm:$0xff]  ;;  %v2920_v15 = vmax.f32 %v200_v7, 0.0  ;;  %v2922_v16 = vmax.f32 %v202_v8, 0.0  ;;  %v2924_v17 = vmax.f32 %v203_v9, 0.0 }
  0x1d   : > { %v2930_v19 = vpack.i.bf16 %v2911_v6, %v2909_v5  ;;  %v2932_v20 = vmax.f32 %v205_v13, 0.0  ;;  %v2934_v21 = vmax.f32 %v206_v14, 0.0  ;;  %v223_v22 = vrot.slane %v2909_v5, 4 }
  0x1e   : > { %v235_v23 = vrot.slane %v2916_v10, 4  ;;  %v279_v24 = vrot.slane %v2911_v6, 4  ;;  %v291_v25 = vrot.slane %v2920_v15, 4  ;;  %v220_v26 = vrot.slane %v2922_v16, 4 }
  0x1f   : > { %2378 = vrot.lane.b32.xlu1 %v2930_v19, %s2816_s6  ;;  %v224_v27 = vsel %vm221_vm0, %v2922_v16, %v223_v22  ;;  %v233_v28 = vrot.slane %v2932_v20, 4  ;;  %v277_v29 = vrot.slane %v2924_v17, 4  ;;  %v289_v30 = vrot.slane %v2934_v21, 4 }
  0x20   : > { %v232_v31 = vperm.slane %v224_v27, %v2926_v18  ;;  %v236_v32 = vsel %vm221_vm0, %v2932_v20, %v235_v23  ;;  %v280_v33 = vsel %vm221_vm0, %v2924_v17, %v279_v24  ;;  %v292_v34 = vsel %vm221_vm0, %v2934_v21, %v291_v25 }
  0x21   : > { %v244_v35 = vperm.slane %v236_v32, %v2926_v18  ;;  %v288_v36 = vperm.slane %v280_v33, %v2926_v18  ;;  %v300_v37 = vperm.slane %v292_v34, %v2926_v18  ;;  %v222_v38 = vsel %vm221_vm0, %v220_v26, %v2909_v5 }
  0x22   : > { %v228_v40 = vperm.slane %v222_v38, %v2926_v18  ;;  %v234_v41 = vsel %vm221_vm0, %v233_v28, %v2916_v10  ;;  %v278_v42 = vsel %vm221_vm0, %v277_v29, %v2911_v6  ;;  %v259_v44 = vrot.slane %v232_v31, 4  ;;  %v3004_v29 = vld [vmem:[%s2904_s5 + $0x28] sm:$0x3] }
  0x23   : > { %v257_v43 = vrot.slane %v244_v35, 4  ;;  %v313_v45 = vrot.slane %v300_v37, 4  ;;  %v240_v46 = vperm.slane %v234_v41, %v2926_v18  ;;  %v315_v47 = vrot.slane %v288_v36, 4 }
  0x24   : > { %v247_v48 = vrot.slane %v228_v40, 4  ;;  %v284_v49 = vperm.slane %v278_v42, %v2926_v18  ;;  %v290_v50 = vsel %vm221_vm0, %v289_v30, %v2920_v15  ;;  %v260_v4 = vsel %vm221_vm0, %v244_v35, %v259_v44 }
  0x25   : > { %v258_v51 = vsel %vm221_vm0, %v257_v43, %v232_v31  ;;  %v314_v52 = vsel %vm221_vm0, %v313_v45, %v288_v36  ;;  %v245_v53 = vrot.slane %v240_v46, 4  ;;  %v296_v54 = vperm.slane %v290_v50, %v2926_v18 }
  0x26   : > { %v264_v55 = vperm.slane %v258_v51, %v2960_v39  ;;  %v320_v56 = vperm.slane %v314_v52, %v2960_v39  ;;  %v248_v57 = vsel %vm221_vm0, %v240_v46, %v247_v48  ;;  %v303_v58 = vrot.slane %v284_v49, 4  ;;  %v207_v48 = vld [vmem:[%s2904_s5 + $0x58] sm:$0x3] }
  0x27   : > { %v256_v59 = vperm.slane %v248_v57, %v2960_v39  ;;  %v301_v60 = vrot.slane %v296_v54, 4  ;;  %v246_v61 = vsel %vm221_vm0, %v245_v53, %v228_v40  ;;  %v316_v9 = vsel %vm221_vm0, %v300_v37, %v315_v47 }
  0x28   : > { %v2392_v62 = vpack.i.bf16 %v320_v56, %v264_v55  ;;  %v304_v63 = vsel %vm221_vm0, %v296_v54, %v303_v58  ;;  %v2981_v0 = vperm.slane %v246_v61, %v2960_v39  ;;  %v2382_v14 = vpack.i.bf16 %v2920_v15, %v2916_v10 }
  0x29   : > { %v312_v1 = vperm.slane %v304_v63, %v2960_v39  ;;  %v271_v2 = vrot.slane %v256_v59, 4  ;;  %v302_v3 = vsel %vm221_vm0, %v301_v60, %v284_v49  ;;  %v268_v23 = vperm.slane %v260_v4, %v2960_v39  ;;  %v198_v63 = vld [vmem:[%s2904_s5 + $0x10] sm:$0x3] }
  0x2a   : > { %2393 = vrot.lane.b32.xlu1 %v2392_v62, %s2817_s7  ;;  %v269_v7 = vrot.slane %v2981_v0, 4  ;;  %v2989_v8 = vperm.slane %v302_v3, %v2960_v39  ;;  %2383 = vrot.lane.b32.xlu2 %v2382_v14, %s2816_s6  ;;  %v324_v28 = vperm.slane %v316_v9, %v2960_v39  ;;  %v1463_v30 = vrot.slane %v2916_v10, 2  ;;  %v204_v62 = vld [vmem:[%s2904_s5 + $0x40] sm:$0x3] }
  0x2b   : > { %v327_v11 = vrot.slane %v312_v1, 4  ;;  %v2387_v12 = vpack.i.bf16 %v312_v1, %v256_v59  ;;  %v272_v13 = vsel %vm221_vm0, 0.0, %v271_v2  ;;  %v1464_v31 = vrot.slane %v2920_v15, 2 }
  0x2c   : > { %v325_v22 = vrot.slane %v2989_v8, 4  ;;  %v270_v26 = vsel %vm221_vm0, 0.0, %v269_v7  ;;  %v275_v32 = vrot.slane %v268_v23, 4  ;;  %v1473_v33 = vrot.slane %v2932_v20, 2 }
  0x2d   : > { %2388 = vrot.lane.b32.xlu0 %v2387_v12, %s2818_s8  ;;  %v328_v24 = vsel %vm221_vm0, 0.0, %v327_v11  ;;  %v1474_v34 = vrot.slane %v2934_v21, 2  ;;  %v2397_v36 = vpack.i.bf16 %v324_v28, %v268_v23  ;;  %v3011_v37 = vsel %vm1457_vm1, %v1463_v30, %v1464_v31 }
  0x2e   : > { %v2407_v25 = vpack.i.bf16 %v328_v24, %v272_v13  ;;  %v326_v27 = vsel %vm221_vm0, 0.0, %v325_v22  ;;  %v213_v38 = vmax.f32 %v3004_v29, 0.0  ;;  %v331_v40 = vrot.slane %v324_v28, 4 }
  0x2f   : > { %v2402_v35 = vpack.i.bf16 %v326_v27, %v270_v26  ;;  %v1500_v41 = vrot.slane %v3011_v37, 4  ;;  %v273_v42 = vrot.slane %v264_v55, 4  ;;  %v329_v43 = vrot.slane %v320_v56, 4 }
  0x30   : > { %v3017_v44 = vsel %vm1457_vm1, %v1473_v33, %v1474_v34  ;;  %v1466_v45 = vrot.slane %v213_v38, 2  ;;  %v2427_v47 = vpack.i.bf16 %v2934_v21, %v2932_v20  ;;  %v276_v49 = vsel %vm221_vm0, 0.0, %v275_v32 }
  0x31   : > { %v3021_v46 = vsel %vm221_vm0, %v3017_v44, %v1500_v41  ;;  %v332_v50 = vsel %vm221_vm0, 0.0, %v331_v40  ;;  %v274_v51 = vsel %vm221_vm0, 0.0, %v273_v42  ;;  %v330_v52 = vsel %vm221_vm0, 0.0, %v329_v43 }
  0x32   : > { %2408 = vrot.lane.b32.xlu1 %v2407_v25, %s2819_s9  ;;  %2398 = vrot.lane.b32.xlu2 %v2397_v36, %s2821_s11  ;;  %v3033_v53 = vsel %vm1457_vm1, %v1464_v31, %v1466_v45  ;;  %v219_v54 = vmax.f32 %v207_v48, 0.0  ;;  %v2417_v56 = vpack.i.bf16 %v332_v50, %v276_v49  ;;  %v2412_v57 = vpack.i.bf16 %v330_v52, %v274_v51 }
  0x33   : > { %v1556_v55 = vrot.slane %v3033_v53, 4  ;;  %v2422_v61 = vpack.i.bf16 %v2924_v17, %v2922_v16  ;;  %v1458_v1 = vrot.slane %v2909_v5, 2  ;;  %v1459_v2 = vrot.slane %v2911_v6, 2 }
  0x34   : > { %v1476_v58 = vrot.slane %v219_v54, 2  ;;  %v216_v3 = vmax.f32 %v204_v62, 0.0  ;;  %v210_v4 = vmax.f32 %v198_v63, 0.0  ;;  %v1468_v11 = vrot.slane %v2922_v16, 2 }
  0x35   : > { %2403 = vrot.lane.b32.xlu0 %v2402_v35, %s2820_s10  ;;  %v3056_v7 = vsel %vm1457_vm1, %v1458_v1, %v1459_v2  ;;  %v1469_v12 = vrot.slane %v2924_v17, 2  ;;  %v840_v23 = vrot.slane %v2916_v10, 1  ;;  %v841_v24 = vrot.slane %v2920_v15, 1 }
  0x36   : > { %v3038_v59 = vsel %vm1457_vm1, %v1474_v34, %v1476_v58  ;;  %v1461_v9 = vrot.slane %v210_v4, 2  ;;  %v1471_v13 = vrot.slane %v216_v3, 2  ;;  %v843_v25 = vrot.slane %v213_v38, 1 }
  0x37   : > { %v3042_v60 = vsel %vm221_vm0, %v3038_v59, %v1556_v55  ;;  %v2462_v26 = vpack.i.bf16 %v3033_v53, %v3011_v37  ;;  %v3076_v27 = vsel %vm1457_vm1, %v1468_v11, %v1469_v12  ;;  %v835_v30 = vrot.slane %v2909_v5, 1 }
  0x38   : > { %4693 = vst [vmem:[#allocation6_spill] sm:$0xff] %v3076_v27  ;;  %v3079_v28 = vsel %vm1457_vm1, %v1469_v12, %v1471_v13  ;;  %v3085_v29 = vsel %vm834_vm2, %v841_v24, %v843_v25  ;;  %v836_v31 = vrot.slane %v2911_v6, 1  ;;  %v838_v32 = vrot.slane %v210_v4, 1 }
  0x39   : > { %4694 = vst [vmem:[#allocation7_spill] sm:$0xff] %v3079_v28  ;;  %v2467_v15 = vpack.i.bf16 %v3079_v28, %v3076_v27  ;;  %v850_v33 = vrot.slane %v2932_v20, 1  ;;  %v851_v34 = vrot.slane %v2934_v21, 1  ;;  %v853_v35 = vrot.slane %v219_v54, 1 }
  0x3a   : > { %2428 = vrot.lane.b32.xlu1 %v2427_v47, %s2816_s6  ;;  %2413 = vrot.lane.b32.xlu2 %v2412_v57, %s2823_s13  ;;  %4696 = vst [vmem:[#allocation9_spill] sm:$0xff] %v3085_v29  ;;  %v3099_v36 = vsel %vm834_vm2, %v835_v30, %v836_v31  ;;  %v3102_v38 = vsel %vm834_vm2, %v836_v31, %v838_v32  ;;  %v845_v40 = vrot.slane %v2922_v16, 1  ;;  %v846_v5 = vrot.slane %v2924_v17, 1 }
  0x3b   : > { %4697 = vst [vmem:[#allocation10_spill] sm:$0xff] %v3099_v36  ;;  %v2452_v41 = vpack.i.bf16 %v3038_v59, %v3017_v44  ;;  %v848_v6 = vrot.slane %v216_v3, 1  ;;  %v3111_v20 = vsel %vm834_vm2, %v850_v33, %v851_v34  ;;  %v3114_v21 = vsel %vm834_vm2, %v851_v34, %v853_v35 }
  0x3c   : > { %4698 = vst [vmem:[#allocation11_spill] sm:$0xff] %v3102_v38  ;;  %v3117_v42 = vsel %vm834_vm2, %v845_v40, %v846_v5  ;;  %v2472_v17 = vpack.i.bf16 %v3114_v21, %v3111_v20  ;;  %v2507_v45 = vpack.i.bf16 %v3102_v38, %v3099_v36  ;;  %v1554_v48 = vrot.slane %v3038_v59, 4 }
  0x3d   : > { %2418 = vrot.lane.b32.xlu0 %v2417_v56, %s2822_s12  ;;  %4699 = vst [vmem:[#allocation12_spill] sm:$0xff] %v3111_v20  ;;  %v3120_v16 = vsel %vm834_vm2, %v846_v5, %v848_v6  ;;  %v1542_v49 = vrot.slane %v3079_v28, 4  ;;  %v1486_v50 = vrot.slane %v3076_v27, 4 }
  0x3e   : > { %4700 = vst [vmem:[#allocation13_spill] sm:$0xff] %v3114_v21  ;;  %v2482_v43 = vpack.i.bf16 %v3120_v16, %v3117_v42  ;;  %v1555_v52 = vsel %vm221_vm0, %v1554_v48, %v3033_v53 }
  0x3f   : > { %4701 = vst [vmem:[#allocation14_spill] sm:$0xff] %v3117_v42  ;;  %v1487_v55 = vsel %vm221_vm0, %v1486_v50, %v3056_v7 }
  0x40   : > { %4702 = vst [vmem:[#allocation15_spill] sm:$0xff] %v3120_v16  ;;  %v3167_v57 = vperm.slane %v1487_v55, %v2926_v18 }
  0x42   : > { %2438 = vrot.lane.b32.xlu1 %v2382_v14, %s2824_s14  ;;  %2443 = vrot.lane.b32.xlu2 %v2422_v61, %s2824_s14  ;;  %v3063_v14 = vsel %vm1457_vm1, %v1459_v2, %v1461_v9 }
  0x43   : > { %4692 = vst [vmem:[#allocation5_spill] sm:$0xff] %v3063_v14  ;;  %v2487_v22 = vpack.i.bf16 %v3063_v14, %v3056_v7  ;;  %v1543_v54 = vsel %vm221_vm0, %v1542_v49, %v3063_v14 }
  0x44   : > { %v3164_v56 = vperm.slane %v1543_v54, %v2926_v18 }
  0x45   : > { %2423 = vrot.lane.b32.xlu0 %v2422_v61, %s2816_s6 }
  0x4a   : > { %1886 = vrot.lane.b32.xlu1 %v3017_v44, %s2824_s14  ;;  %1888 = vrot.lane.b32.xlu2 %v3038_v59, %s2824_s14 }
  0x4d   : > { %2433 = vrot.lane.b32.xlu0 %v2930_v19, %s2824_s14  ;;  %v3082_v19 = vsel %vm834_vm2, %v840_v23, %v841_v24 }
  0x4e   : > { %4695 = vst [vmem:[#allocation8_spill] sm:$0xff] %v3082_v19  ;;  %v2492_v10 = vpack.i.bf16 %v3085_v29, %v3082_v19 }
  0x52   : > { %2463 = vrot.lane.b32.xlu1 %v2462_v26, %s2816_s6  ;;  %2468 = vrot.lane.b32.xlu2 %v2467_v15, %s2816_s6 }
  0x55   : > { %2448 = vrot.lane.b32.xlu0 %v2427_v47, %s2824_s14  ;;  %v1498_v47 = vrot.slane %v3017_v44, 4 }
  0x57   : > { %v1499_v51 = vsel %vm221_vm0, %v1498_v47, %v3011_v37 }
  0x58   : > { %v3161_v44 = vperm.slane %v1499_v51, %v2926_v18 }
  0x5a   : > { %1880 = vrot.lane.b32.xlu1 %v3033_v53, %s2824_s14  ;;  %1882 = vrot.lane.b32.xlu2 %v3076_v27, %s2824_s14  ;;  %v1510_v58 = vrot.slane %v3161_v44, 4 }
  0x5c   : > { %v1511_v62 = vsel %vm221_vm0, %v1510_v58, %v3167_v57 }
  0x5d   : > { %2453 = vrot.lane.b32.xlu0 %v2452_v41, %s2816_s6  ;;  %v3183_v1 = vperm.slane %v1511_v62, %v2960_v39 }
  0x5f   : > { %4703 = vst [vmem:[#allocation16_spill] sm:$0xff] %v3183_v1  ;;  %v1534_v3 = vrot.slane %v3183_v1, 4 }
  0x61   : > { %v1535_v9 = vsel %vm221_vm0, 0.0, %v1534_v3 }
  0x62   : > { %2473 = vrot.lane.b32.xlu1 %v2472_v17, %s2816_s6  ;;  %2478 = vrot.lane.b32.xlu2 %v2492_v10, %s2824_s14 }
  0x65   : > { %2458 = vrot.lane.b32.xlu0 %v2472_v17, %s2824_s14 }
  0x6a   : > { %2488 = vrot.lane.b32.xlu1 %v2487_v22, %s2816_s6  ;;  %1874 = vrot.lane.b32.xlu2 %v3056_v7, %s2824_s14 }
  0x6d   : > { %1878 = vrot.lane.b32.xlu0 %v3011_v37, %s2824_s14  ;;  %v3170_v37 = vperm.slane %v1555_v52, %v2926_v18 }
  0x6f   : > { %v1566_v59 = vrot.slane %v3170_v37, 4 }
  0x71   : > { %v1567_v63 = vsel %vm221_vm0, %v1566_v59, %v3164_v56 }
  0x72   : > { %2493 = vrot.lane.b32.xlu1 %v2492_v10, %s2816_s6  ;;  %2498 = vrot.lane.b32.xlu2 %v2482_v43, %s2816_s6  ;;  %v3186_v2 = vperm.slane %v1567_v63, %v2960_v39 }
  0x74   : > { %4704 = vst [vmem:[#allocation17_spill] sm:$0xff] %v3186_v2  ;;  %v1590_v4 = vrot.slane %v3186_v2, 4 }
  0x75   : > { %1884 = vrot.lane.b32.xlu0 %v3079_v28, %s2824_s14 }
  0x76   : > { %v1591_v11 = vsel %vm221_vm0, 0.0, %v1590_v4 }
  0x77   : > { %v2512_v12 = vpack.i.bf16 %v1591_v11, %v1535_v9 }
  0x7a   : > { %2508 = vrot.lane.b32.xlu1 %v2507_v45, %s2816_s6 }
  0x7d   : > { %2483 = vrot.lane.b32.xlu0 %v2482_v43, %s2824_s14 }
  0x82   : > { %2513 = vrot.lane.b32.xlu1 %v2512_v12, %s2820_s10 }
  0x84   : > { %v3176_v61 = vpop.permute.xlu2 %2383 }
  0x85   : > { %1876 = vrot.lane.b32.xlu0 %v3063_v14, %s2824_s14  ;;  %v2386_v25 = vunpack.i.h.bf16 %v3176_v61  ;;  %v2385_v26 = vunpack.i.l.bf16 %v3176_v61 }
  0x87   : > { %v512_v51 = vrot.slane %v2386_v25, 4  ;;  %v456_v52 = vrot.slane %v2385_v26, 4 }
  0x8c   : > { %v3193_v22 = vpop.permute.xlu2 %2398 }
  0x8d   : > { %2503 = vrot.lane.b32.xlu0 %v2507_v45, %s2824_s14  ;;  %4705 = vst [vmem:[#allocation18_spill] sm:$0xff] %v3193_v22 }
  0x91   : > { %v3172_v53 = vpop.permute.xlu1 %2378 }
  0x92   : > { %v2381_v4 = vunpack.i.h.bf16 %v3172_v53  ;;  %v2380_v9 = vunpack.i.l.bf16 %v3172_v53 }
  0x94   : > { %v2414_v15 = vpop.permute.xlu2 %2413 }
  0x95   : > { %v2416_v43 = vunpack.i.h.bf16 %v2414_v15  ;;  %v2415_v17 = vunpack.i.l.bf16 %v2414_v15 }
  0x9c   : > { %v2394_v13 = vpop.permute.xlu1 %2393  ;;  %v3215_v62 = vpop.permute.xlu2 %2443 }
  0x9d   : > { %v2396_v34 = vunpack.i.h.bf16 %v2394_v13  ;;  %v2395_v35 = vunpack.i.l.bf16 %v2394_v13 }
  0x9f   : > { %v2389_v23 = vpop.permute.xlu0 %2388 }
  0xa0   : > { %v2391_v40 = vunpack.i.h.bf16 %v2389_v23  ;;  %v2390_v41 = vunpack.i.l.bf16 %v2389_v23  ;;  %v500_v23 = vrot.slane %v2381_v4, 4 }
  0xa4   : > { %v2409_v24 = vpop.permute.xlu1 %2408 }
  0xa5   : > { %v2411_v30 = vunpack.i.h.bf16 %v2409_v24  ;;  %v2410_v31 = vunpack.i.l.bf16 %v2409_v24 }
  0xa7   : > { %v2404_v10 = vpop.permute.xlu0 %2403 }
  0xa8   : > { %v2406_v32 = vunpack.i.h.bf16 %v2404_v10  ;;  %v2405_v33 = vunpack.i.l.bf16 %v2404_v10 }
  0xaa   : > { %v403_v5 = vsel %vm389_vm3, %v2989_v8, %v2406_v32  ;;  %v390_v6 = vsel %vm389_vm3, %v2981_v0, %v2405_v33 }
  0xab   : > { %v404_v45 = vsel %vm391_vm4, %v403_v5, %v2391_v40  ;;  %v392_v47 = vsel %vm391_vm4, %v390_v6, %v2390_v41 }
  0xac   : > { %v394_v48 = vsel %vm393_vm5, %v392_v47, %v2410_v31  ;;  %v405_v49 = vsel %vm393_vm5, %v404_v45, %v2411_v30  ;;  %v2429_v50 = vpop.permute.xlu1 %2428  ;;  %v444_v30 = vrot.slane %v2380_v9, 4  ;;  %v2446_v31 = vunpack.i.h.bf16 %v3215_v62  ;;  %v3232_v47 = vpop.permute.xlu2 %1888 }
  0xad   : > { %v396_v54 = vsel %vm395_vm6, %v394_v48, %v2395_v35  ;;  %v406_v8 = vsel %vm395_vm6, %v405_v49, %v2396_v34  ;;  %v2431_v58 = vunpack.i.h.bf16 %v2429_v50  ;;  %v2430_v59 = vunpack.i.l.bf16 %v2429_v50 }
  0xae   : > { %v3208_v0 = vsel %vm397_vm7, %v396_v54, %v2415_v17  ;;  %v3211_v55 = vsel %vm397_vm7, %v406_v8, %v2416_v43  ;;  %v704_v48 = vrot.slane %v2446_v31, 4  ;;  %v2445_v49 = vunpack.i.l.bf16 %v3215_v62 }
  0xaf   : > { %4706 = vst [vmem:[#allocation19_spill] sm:$0xff] %v3208_v0  ;;  %v3213_v61 = vpop.permute.xlu0 %2418  ;;  %v513_v63 = vsel %vm221_vm0, %v2431_v58, %v512_v51  ;;  %v457_v3 = vsel %vm221_vm0, %v2430_v59, %v456_v52  ;;  %v510_v24 = vrot.slane %v2431_v58, 4  ;;  %v454_v10 = vrot.slane %v2430_v59, 4 }
  0xb0   : > { %4707 = vst [vmem:[#allocation20_spill] sm:$0xff] %v3211_v55  ;;  %v521_v12 = vperm.slane %v513_v63, %v2926_v18  ;;  %v465_v13 = vperm.slane %v457_v3, %v2926_v18 }
  0xb1   : > { %4708 = vst [vmem:[#allocation21_spill] sm:$0xff] %v3213_v61  ;;  %v511_v6 = vsel %vm221_vm0, %v510_v24, %v2386_v25  ;;  %v455_v43 = vsel %vm221_vm0, %v454_v10, %v2385_v26 }
  0xb2   : > { %v534_v34 = vrot.slane %v521_v12, 4  ;;  %v478_v35 = vrot.slane %v465_v13, 4  ;;  %v3246_v58 = vperm.slane %v511_v6, %v2926_v18  ;;  %v3249_v59 = vperm.slane %v455_v43, %v2926_v18 }
  0xb4   : > { %v3221_v11 = vpop.permute.xlu1 %2438 }
  0xb7   : > { %v2424_v15 = vpop.permute.xlu0 %2423 }
  0xb8   : > { %v2426_v32 = vunpack.i.h.bf16 %v2424_v15  ;;  %v2425_v33 = vunpack.i.l.bf16 %v2424_v15 }
  0xba   : > { %v498_v40 = vrot.slane %v2426_v32, 4  ;;  %v501_v53 = vsel %vm221_vm0, %v2426_v32, %v500_v23  ;;  %v442_v41 = vrot.slane %v2425_v33, 4  ;;  %v445_v5 = vsel %vm221_vm0, %v2425_v33, %v444_v30 }
  0xbb   : > { %v509_v17 = vperm.slane %v501_v53, %v2926_v18  ;;  %v453_v45 = vperm.slane %v445_v5, %v2926_v18  ;;  %v2441_v53 = vunpack.i.h.bf16 %v3221_v11 }
  0xbc   : > { %v499_v50 = vsel %vm221_vm0, %v498_v40, %v2381_v4  ;;  %v443_v51 = vsel %vm221_vm0, %v442_v41, %v2380_v9  ;;  %v3237_v52 = vpop.permute.xlu1 %1886 }
  0xbd   : > { %v3240_v54 = vperm.slane %v499_v50, %v2926_v18  ;;  %v536_v25 = vrot.slane %v509_v17, 4  ;;  %v3243_v26 = vperm.slane %v443_v51, %v2926_v18  ;;  %v480_v8 = vrot.slane %v453_v45, 4 }
  0xbe   : > { %v479_v62 = vsel %vm221_vm0, %v478_v35, %v453_v45  ;;  %v535_v63 = vsel %vm221_vm0, %v534_v34, %v509_v17  ;;  %v648_v17 = vrot.slane %v2445_v49, 4 }
  0xbf   : > { %v524_v3 = vrot.slane %v3240_v54, 4  ;;  %v468_v4 = vrot.slane %v3243_v26, 4  ;;  %v2434_v9 = vpop.permute.xlu0 %2433  ;;  %v485_v23 = vperm.slane %v479_v62, %v2960_v39  ;;  %v541_v24 = vperm.slane %v535_v63, %v2960_v39 }
  0xc0   : > { %v2436_v10 = vunpack.i.h.bf16 %v2434_v9  ;;  %v2435_v15 = vunpack.i.l.bf16 %v2434_v9  ;;  %v481_v30 = vsel %vm221_vm0, %v465_v13, %v480_v8  ;;  %v537_v32 = vsel %vm221_vm0, %v521_v12, %v536_v25 }
  0xc1   : > { %v2522_v33 = vpack.i.bf16 %v541_v24, %v485_v23  ;;  %v3260_v35 = vperm.slane %v481_v30, %v2960_v39  ;;  %v3263_v34 = vperm.slane %v537_v32, %v2960_v39  ;;  %v469_v40 = vsel %vm221_vm0, %v3249_v59, %v468_v4 }
  0xc2   : > { %v3269_v41 = vsel %vm221_vm0, %v704_v48, %v2436_v10  ;;  %v706_v5 = vrot.slane %v2436_v10, 4  ;;  %v650_v6 = vrot.slane %v2435_v15, 4  ;;  %v2440_v13 = vunpack.i.l.bf16 %v3221_v11  ;;  %v3287_v11 = vpop.permute.xlu2 %2468 }
  0xc3   : > { %2523 = vrot.lane.b32.xlu2 %v2522_v33, %s2817_s7  ;;  %v2527_v12 = vpack.i.bf16 %v3263_v34, %v3260_v35  ;;  %v477_v43 = vperm.slane %v469_v40, %v2960_v39  ;;  %v525_v48 = vsel %vm221_vm0, %v3246_v58, %v524_v3  ;;  %v718_v25 = vrot.slane %v2441_v53, 4 }
  0xc4   : > { %v3277_v45 = vsel %vm221_vm0, %v2446_v31, %v706_v5  ;;  %v3280_v50 = vsel %vm221_vm0, %v2445_v49, %v650_v6  ;;  %v3284_v51 = vpop.permute.xlu1 %2463  ;;  %v533_v8 = vperm.slane %v525_v48, %v2960_v39  ;;  %v662_v63 = vrot.slane %v2440_v13, 4 }
  0xc5   : > { %2528 = vrot.lane.b32.xlu1 %v2527_v12, %s2821_s11  ;;  %v492_v62 = vrot.slane %v477_v43, 4  ;;  %v649_v31 = vsel %vm221_vm0, %v648_v17, %v2435_v15  ;;  %v494_v10 = vrot.slane %v485_v23, 4  ;;  %v550_v33 = vrot.slane %v541_v24, 4 }
  0xc6   : > { %v2517_v9 = vpack.i.bf16 %v533_v8, %v477_v43  ;;  %v548_v32 = vrot.slane %v533_v8, 4  ;;  %v655_v6 = vperm.slane %v649_v31, %v2926_v18  ;;  %v466_v24 = vrot.slane %v3249_v59, 4 }
  0xc7   : > { %v2449_v4 = vpop.permute.xlu0 %2448  ;;  %v493_v3 = vsel %vm221_vm0, 0.0, %v492_v62  ;;  %v551_v62 = vsel %vm221_vm0, 0.0, %v550_v33 }
  0xc8   : > { %v2451_v49 = vunpack.i.h.bf16 %v2449_v4  ;;  %v2450_v30 = vunpack.i.l.bf16 %v2449_v4  ;;  %2518 = vrot.lane.b32.xlu0 %v2517_v9, %s2818_s8  ;;  %v549_v15 = vsel %vm221_vm0, 0.0, %v548_v32  ;;  %v674_v31 = vrot.slane %v655_v6, 4 }
  0xc9   : > { %v2537_v43 = vpack.i.bf16 %v549_v15, %v493_v3  ;;  %v467_v3 = vsel %vm221_vm0, %v466_v24, %v3243_v26 }
  0xca   : > { %v716_v40 = vrot.slane %v2451_v49, 4  ;;  %v3294_v5 = vsel %vm221_vm0, %v2451_v49, %v718_v25  ;;  %v660_v12 = vrot.slane %v2450_v30, 4  ;;  %v3298_v48 = vsel %vm221_vm0, %v2450_v30, %v662_v63 }
  0xcb   : > { %v495_v25 = vsel %vm221_vm0, 0.0, %v494_v10  ;;  %v522_v49 = vrot.slane %v3246_v58, 4 }
  0xcc   : > { %v3302_v23 = vsel %vm221_vm0, %v716_v40, %v2441_v53  ;;  %v3304_v17 = vpop.permute.xlu1 %1880  ;;  %v661_v8 = vsel %vm221_vm0, %v660_v12, %v2440_v13  ;;  %v3313_v53 = vpop.permute.xlu2 %1882  ;;  %v2542_v59 = vpack.i.bf16 %v551_v62, %v495_v25  ;;  %v3333_v40 = vperm.slane %v467_v3, %v2960_v39 }
  0xcd   : > { %v667_v4 = vperm.slane %v661_v8, %v2926_v18  ;;  %2538 = vrot.lane.b32.xlu1 %v2537_v43, %s2819_s9  ;;  %v1968_v63 = vrot.slane %v3304_v17, 4  ;;  %v523_v12 = vsel %vm221_vm0, %v522_v49, %v3240_v54  ;;  %v4637_v8 = vunpack.i.l.bf16 %v3287_v11 }
  0xce   : > { %4710 = vst [vmem:[#allocation23_spill] sm:$0xff] %v3333_v40  ;;  %v490_v43 = vrot.slane %v3333_v40, 4  ;;  %v3346_v24 = vperm.slane %v523_v12, %v2960_v39  ;;  %v1898_v40 = vrot.slane %v3313_v53, 4 }
  0xcf   : > { %v3315_v9 = vpop.permute.xlu0 %2453  ;;  %v3320_v13 = vsel %vm221_vm0, %v3232_v47, %v1968_v63  ;;  %v675_v10 = vsel %vm221_vm0, %v667_v4, %v674_v31  ;;  %v672_v30 = vrot.slane %v667_v4, 4 }
  0xd0   : > { %2543 = vrot.lane.b32.xlu0 %v2542_v59, %s2823_s13  ;;  %v3327_v32 = vperm.slane %v675_v10, %v2960_v39  ;;  %4712 = vst [vmem:[#allocation25_spill] sm:$0xff] %v3346_v24  ;;  %v4638_v25 = vunpack.i.l.bf16 %v3315_v9  ;;  %v491_v4 = vsel %vm221_vm0, 0.0, %v490_v43  ;;  %v546_v63 = vrot.slane %v3346_v24, 4 }
  0xd1   : > { %v673_v58 = vsel %vm221_vm0, %v672_v30, %v655_v6  ;;  %v4636_v6 = vunpack.i.h.bf16 %v3287_v11  ;;  %v4643_v10 = vunpack.i.h.bf16 %v3315_v9 }
  0xd2   : > { %765 = vrot.lane.b32.xlu2 %v3327_v32, %s2818_s8  ;;  %v3340_v26 = vperm.slane %v673_v58, %v2960_v39  ;;  %v547_v49 = vsel %vm221_vm0, 0.0, %v546_v63  ;;  %v1692_v58 = vrot.slane %v4637_v8, 4  ;;  %v1704_v12 = vrot.slane %v4638_v25, 4 }
  0xd3   : > { %v1748_v59 = vrot.slane %v4636_v6, 4  ;;  %v2532_v30 = vpack.i.bf16 %v547_v49, %v491_v4  ;;  %v931_v63 = vrot.slane %v3114_v21, 4  ;;  %v875_v6 = vrot.slane %v3111_v20, 4 }
  0xd4   : > { %v3329_v33 = vpop.permute.xlu1 %2473  ;;  %4711 = vst [vmem:[#allocation24_spill] sm:$0xff] %v3340_v26  ;;  %v3351_v54 = vpop.permute.xlu2 %2478  ;;  %v696_v62 = vrot.slane %v3340_v26, 4  ;;  %v2465_v4 = vunpack.i.l.bf16 %v3284_v51  ;;  %v496_v49 = vrot.slane %v3260_v35, 4  ;;  %v3377_v8 = vperm.slane %v3021_v46, %v2926_v18 }
  0xd5   : > { %4709 = vst [vmem:[#allocation22_spill] sm:$0xff] %v3329_v33  ;;  %v552_v26 = vrot.slane %v3263_v34, 4  ;;  %v2466_v46 = vunpack.i.h.bf16 %v3284_v51  ;;  %v863_v20 = vrot.slane %v3117_v42, 4  ;;  %v4655_v0 = vunpack.i.l.bf16 %v3329_v33 }
  0xd6   : > { %v697_v31 = vsel %vm221_vm0, 0.0, %v696_v62  ;;  %4713 = vst [vmem:[#allocation26_spill] sm:$0xff] %v3377_v8  ;;  %v1705_v62 = vsel %vm221_vm0, %v1704_v12, %v2465_v4 }
  0xd7   : > { %v3342_v15 = vpop.permute.xlu0 %2458  ;;  %761 = vrot.lane.b32.xlu1 %v697_v31, %s2820_s10  ;;  %v3406_v51 = vperm.slane %v1705_v62, %v2926_v18 }
  0xda   : > { %2533 = vrot.lane.b32.xlu2 %v2532_v30, %s2820_s10  ;;  %v1760_v30 = vrot.slane %v4643_v10, 4 }
  0xdc   : > { %v3362_v3 = vpop.permute.xlu1 %2488  ;;  %v3401_v12 = vpop.permute.xlu2 %1874  ;;  %v1761_v34 = vsel %vm221_vm0, %v1760_v30, %v2466_v46  ;;  %v1966_v30 = vrot.slane %v3232_v47, 4 }
  0xdd   : > { %v4645_v43 = vunpack.i.h.bf16 %v3362_v3  ;;  %v4714_v2 = vunpack.i.l.bf16 %v3362_v3  ;;  %v1899_v62 = vsel %vm221_vm0, %v1898_v40, %v3401_v12  ;;  %v1910_v40 = vrot.slane %v3237_v52, 4 }
  0xdf   : > { %v1879_v31 = vpop.permute.xlu0 %1878  ;;  %v1749_v25 = vsel %vm221_vm0, %v1748_v59, %v4645_v43  ;;  %v1693_v35 = vsel %vm221_vm0, %v1692_v58, %v4714_v2  ;;  %v932_v59 = vsel %vm221_vm0, %v931_v63, %v3085_v29  ;;  %v497_v2 = vsel %vm221_vm0, 0.0, %v496_v49 }
  0xe0   : > { %v3386_v1 = vperm.slane %v1749_v25, %v2926_v18  ;;  %v3395_v10 = vperm.slane %v1693_v35, %v2926_v18  ;;  %v1912_v24 = vrot.slane %v1879_v31, 4  ;;  %v876_v25 = vsel %vm221_vm0, %v875_v6, %v3082_v19 }
  0xe1   : > { %v3416_v6 = vperm.slane %v3042_v60, %v2926_v18  ;;  %v553_v49 = vsel %vm221_vm0, 0.0, %v552_v26  ;;  %v3427_v63 = vperm.slane %v932_v59, %v2926_v18  ;;  %v3430_v60 = vperm.slane %v876_v25, %v2926_v18 }
  0xe2   : > { %v1718_v58 = vrot.slane %v3395_v10, 4  ;;  %v3411_v35 = vsel %vm221_vm0, %v3237_v52, %v1912_v24  ;;  %v1774_v43 = vrot.slane %v3386_v1, 4  ;;  %v2547_v21 = vpack.i.bf16 %v553_v49, %v497_v2 }
  0xe3   : > { %4715 = vst [vmem:[#allocation27_spill] sm:$0xff] %v3416_v6  ;;  %v3433_v19 = vperm.slane %v1761_v34, %v2926_v18  ;;  %v1762_v2 = vrot.slane %v2466_v46, 4  ;;  %v1706_v49 = vrot.slane %v2465_v4, 4  ;;  %v3445_v25 = vperm.slane %v1899_v62, %v2926_v18 }
  0xe4   : > { %v1719_v24 = vsel %vm221_vm0, %v3406_v51, %v1718_v58  ;;  %4716 = vst [vmem:[#allocation28_spill] sm:$0xff] %v3427_v63  ;;  %2548 = vrot.lane.b32.xlu2 %v2547_v21, %s2822_s12  ;;  %v1911_v52 = vsel %vm221_vm0, %v1910_v40, %v1879_v31  ;;  %v3457_v46 = vperm.slane %v3269_v41, %v2926_v18  ;;  %v2481_v62 = vunpack.i.h.bf16 %v3351_v54 }
  0xe5   : > { %4717 = vst [vmem:[#allocation29_spill] sm:$0xff] %v3430_v60  ;;  %v3441_v58 = vperm.slane %v1719_v24, %v2960_v39  ;;  %v1775_v34 = vsel %vm221_vm0, %v3433_v19, %v1774_v43  ;;  %v3461_v4 = vperm.slane %v3277_v45, %v2926_v18  ;;  %v3465_v43 = vperm.slane %v3280_v50, %v2926_v18 }
  0xe6   : > { %v3453_v21 = vperm.slane %v1775_v34, %v2960_v39  ;;  %v1967_v31 = vsel %vm221_vm0, %v1966_v30, %v3304_v17  ;;  %v4718_v24 = vunpack.i.h.bf16 %v3315_v9  ;;  %v2480_v41 = vunpack.i.l.bf16 %v3351_v54 }
  0xe7   : > { %v3435_v26 = vpop.permute.xlu0 %1884  ;;  %v4719_v45 = vunpack.i.l.bf16 %v3315_v9  ;;  %v2461_v50 = vunpack.i.h.bf16 %v3342_v15  ;;  %v1924_v59 = vrot.slane %v3445_v25, 4  ;;  %v1917_v42 = vperm.slane %v1911_v52, %v2926_v18 }
  0xe8   : > { %v1763_v40 = vsel %vm221_vm0, %v4718_v24, %v1762_v2  ;;  %v2552_v34 = vpack.i.bf16 %v3453_v21, %v3441_v58  ;;  %v3486_v54 = vperm.slane %v3294_v5, %v2926_v18  ;;  %v2460_v2 = vunpack.i.l.bf16 %v3342_v15 }
  0xe9   : > { %v1707_v47 = vsel %vm221_vm0, %v4719_v45, %v1706_v49  ;;  %v3494_v24 = vperm.slane %v3298_v48, %v2926_v18  ;;  %v3497_v52 = vperm.slane %v1967_v31, %v2926_v18  ;;  %v3504_v15 = vperm.slane %v1763_v40, %v2926_v18 }
  0xea   : > { %2553 = vrot.lane.b32.xlu0 %v2552_v34, %s2818_s8  ;;  %v3507_v34 = vperm.slane %v1707_v47, %v2926_v18  ;;  %v1345_v9 = vrot.slane %v2481_v62, 4  ;;  %v1289_v17 = vrot.slane %v2480_v41, 4  ;;  %v1343_v49 = vrot.slane %v2461_v50, 4 }
  0xeb   : > { %4720 = vst [vmem:[#allocation30_spill] sm:$0xff] %v3504_v15  ;;  %v1925_v48 = vsel %vm221_vm0, %v1917_v42, %v1924_v59  ;;  %v3512_v31 = vperm.slane %v3302_v23, %v2926_v18  ;;  %v1287_v5 = vrot.slane %v2460_v2, 4  ;;  %v1900_v30 = vrot.slane %v3401_v12, 4 }
  0xec   : > { %v3519_v47 = vperm.slane %v3320_v13, %v2926_v18  ;;  %v3527_v29 = vperm.slane %v1925_v48, %v2960_v39  ;;  %v1344_v40 = vsel %vm221_vm0, %v1343_v49, %v2481_v62  ;;  %v1346_v13 = vsel %vm221_vm0, %v2461_v50, %v1345_v9 }
  0xed   : > { %v1290_v22 = vsel %vm221_vm0, %v2460_v2, %v1289_v17  ;;  %v1288_v61 = vsel %vm221_vm0, %v1287_v5, %v2480_v41  ;;  %v1901_v59 = vsel %vm221_vm0, %v3313_v53, %v1900_v30  ;;  %v1922_v55 = vrot.slane %v1917_v42, 4  ;;  %v3544_v17 = vpop.permute.xlu1 %2493 }
  0xee   : > { %v1954_v23 = vrot.slane %v3435_v26, 4  ;;  %v1716_v48 = vrot.slane %v3406_v51, 4  ;;  %v4721_v12 = vunpack.i.h.bf16 %v3329_v33  ;;  %v4722_v50 = vunpack.i.l.bf16 %v3362_v3  ;;  %4723 = vst [vmem:[#allocation31_spill] sm:$0xff] %v3544_v17  ;;  %v3585_v33 = vpop.permute.xlu2 %2498 }
  0xef   : > { %v3499_v45 = vpop.permute.xlu0 %2483  ;;  %v864_v42 = vsel %vm221_vm0, %v863_v20, %v3099_v36  ;;  %v1081_v53 = vrot.slane %v4655_v0, 4  ;;  %v3553_v30 = vperm.slane %v1346_v13, %v2926_v18  ;;  %v3556_v51 = vperm.slane %v1290_v22, %v2926_v18 }
  0xf0   : > { %v1137_v62 = vrot.slane %v4721_v12, 4  ;;  %v1694_v9 = vrot.slane %v4722_v50, 4  ;;  %v1350_v49 = vperm.slane %v1344_v40, %v2926_v18  ;;  %v1294_v5 = vperm.slane %v1288_v61, %v2926_v18 }
  0xf1   : > { %v3563_v12 = vperm.slane %v1901_v59, %v2926_v18  ;;  %v4724_v50 = vunpack.i.h.bf16 %v3362_v3  ;;  %v1923_v22 = vsel %vm221_vm0, %v1922_v55, %v3445_v25  ;;  %v3573_v0 = vperm.slane %v864_v42, %v2926_v18 }
  0xf2   : > { %2015 = vrot.lane.b32.xlu0 %v3527_v29, %s2818_s8  ;;  %v4725_v40 = vunpack.i.l.bf16 %v3287_v11  ;;  %v4726_v3 = vrot.slane %v3120_v16, 4  ;;  %v3602_v16 = vperm.slane %v1923_v22, %v2960_v39  ;;  %v1355_v55 = vrot.slane %v1350_v49, 4 }
  0xf3   : > { %v1750_v13 = vrot.slane %v4724_v50, 4  ;;  %v1299_v59 = vrot.slane %v1294_v5, 4 }
  0xf4   : > { %v1695_v61 = vsel %vm221_vm0, %v4725_v40, %v1694_v9  ;;  %v920_v50 = vsel %vm221_vm0, %v4726_v3, %v3102_v38  ;;  %v943_v9 = vrot.slane %v3427_v63, 4  ;;  %v3596_v40 = vperm.slane %v3411_v35, %v2926_v18  ;;  %4727 = vst [vmem:[#allocation32_spill] sm:$0xff] %v3602_v16 }
  0xf5   : > { %v3591_v42 = vperm.slane %v920_v50, %v2926_v18  ;;  %v3613_v38 = vperm.slane %v1695_v61, %v2926_v18  ;;  %v3634_v8 = vpop.permute.xlu1 %2508 }
  0xf7   : > { %v3546_v41 = vpop.permute.xlu0 %1876  ;;  %v944_v35 = vsel %vm221_vm0, %v943_v9, %v3591_v42 }
  0xf8   : > { %v1955_v2 = vsel %vm221_vm0, %v1954_v23, %v3546_v41  ;;  %v887_v23 = vrot.slane %v3430_v60, 4  ;;  %v4732_v60 = vunpack.i.l.bf16 %v3544_v17 }
  0xf9   : > { %v3566_v20 = vperm.slane %v1955_v2, %v2926_v18 }
  0xfa   : > { %v888_v25 = vsel %vm221_vm0, %v887_v23, %v3573_v0  ;;  %v4728_v23 = vunpack.i.h.bf16 %v3287_v11 }
  0xfb   : > { %v1980_v2 = vrot.slane %v3566_v20, 4 }
  0xfc   : > { %v1751_v50 = vsel %vm221_vm0, %v4728_v23, %v1750_v13  ;;  %v4730_v13 = vunpack.i.h.bf16 %v3499_v45  ;;  %v4731_v23 = vunpack.i.l.bf16 %v3499_v45 }
  0xfd   : > { %v1981_v3 = vsel %vm221_vm0, %v3497_v52, %v1980_v2  ;;  %v4729_v2 = vunpack.i.h.bf16 %v3544_v17 }
  0xfe   : > { %v3608_v36 = vperm.slane %v1981_v3, %v2960_v39  ;;  %v1331_v3 = vrot.slane %v4730_v13, 4  ;;  %v1275_v63 = vrot.slane %v4731_v23, 4  ;;  %v1946_v13 = vrot.slane %v3602_v16, 4 }
  0xff   : > { %v1138_v22 = vsel %vm221_vm0, %v1137_v62, %v4729_v2  ;;  %v3620_v11 = vpop.permute.xlu0 %2503  ;;  %v3631_v62 = vperm.slane %v1751_v50, %v2926_v18  ;;  %v1934_v2 = vrot.slane %v3596_v40, 4  ;;  %v1082_v23 = vsel %vm221_vm0, %v1081_v53, %v4732_v60 }
 0x100   : > { %v4672_v61 = vunpack.i.l.bf16 %v3620_v11  ;;  %2043 = vrot.lane.b32.xlu1 %v3608_v36, %s2818_s8  ;;  %v3641_v9 = vperm.slane %v1138_v22, %v2926_v18  ;;  %v4733_v50 = vunpack.i.h.bf16 %v3620_v11  ;;  %v1717_v16 = vsel %vm221_vm0, %v1716_v48, %v3395_v10 }
 0x101   : > { %v4734_v60 = vrot.slane %v3433_v19, 4  ;;  %v4735_v22 = vunpack.i.h.bf16 %v3585_v33  ;;  %v1947_v10 = vsel %vm221_vm0, 0.0, %v1946_v13  ;;  %v4737_v19 = vrot.slane %v3504_v15, 4 }
 0x102   : > { %v1276_v6 = vsel %vm221_vm0, %v1275_v63, %v4672_v61  ;;  %v1332_v28 = vsel %vm221_vm0, %v1331_v3, %v4733_v50  ;;  %v1512_v13 = vrot.slane %v3167_v57, 4  ;;  %v1568_v15 = vrot.slane %v3164_v56, 4 }
 0x103   : > { %v1282_v14 = vperm.slane %v1276_v6, %v2926_v18  ;;  %v1338_v27 = vperm.slane %v1332_v28, %v2926_v18  ;;  %v1773_v53 = vsel %vm221_vm0, %v4734_v60, %v3386_v1  ;;  %v1125_v17 = vrot.slane %v4735_v22, 4 }
 0x104   : > { %v4736_v6 = vrot.slane %v3507_v34, 4  ;;  %v1785_v1 = vsel %vm221_vm0, %v4737_v19, %v3631_v62  ;;  %v3673_v22 = vperm.slane %v1717_v16, %v2960_v39  ;;  %v3676_v61 = vperm.slane %v1773_v53, %v2960_v39 }
 0x105   : > { %v1301_v3 = vrot.slane %v1282_v14, 4  ;;  %v1357_v50 = vrot.slane %v1338_v27, 4  ;;  %v1300_v48 = vsel %vm221_vm0, %v1299_v59, %v1282_v14  ;;  %v1356_v60 = vsel %vm221_vm0, %v1355_v55, %v1338_v27 }
 0x106   : > { %v1729_v28 = vsel %vm221_vm0, %v4736_v6, %v3613_v38  ;;  %v3690_v16 = vperm.slane %v1300_v48, %v2960_v39  ;;  %v3693_v59 = vperm.slane %v1356_v60, %v2960_v39  ;;  %v3699_v57 = vperm.slane %v888_v25, %v2960_v39 }
 0x107   : > { %v1302_v6 = vsel %vm221_vm0, %v1294_v5, %v1301_v3  ;;  %v1358_v63 = vsel %vm221_vm0, %v1350_v49, %v1357_v50  ;;  %v3696_v49 = vperm.slane %v1729_v28, %v2960_v39  ;;  %v3702_v56 = vperm.slane %v944_v35, %v2960_v39 }
 0x108   : > { %2011 = vrot.lane.b32.xlu1 %v1947_v10, %s2820_s10  ;;  %v3684_v14 = vperm.slane %v1302_v6, %v2960_v39  ;;  %v3687_v27 = vperm.slane %v1358_v63, %v2960_v39  ;;  %4738 = vst [vmem:[#allocation33_spill] sm:$0xff] %v3690_v16  ;;  %v3706_v5 = vsel %vm221_vm0, %v1934_v2, %v3563_v12  ;;  %v1323_v53 = vrot.slane %v3690_v16, 4 }
 0x109   : > { %4739 = vst [vmem:[#allocation34_spill] sm:$0xff] %v3699_v57  ;;  %v1379_v63 = vrot.slane %v3693_v59, 4  ;;  %v3713_v28 = vperm.slane %v1785_v1, %v2960_v39  ;;  %v3716_v25 = vperm.slane %v1082_v23, %v2926_v18  ;;  %v1740_v35 = vrot.slane %v3673_v22, 4 }
 0x10a   : > { %4740 = vst [vmem:[#allocation35_spill] sm:$0xff] %v3702_v56  ;;  %v2557_v55 = vpack.i.bf16 %v3687_v27, %v3684_v14  ;;  %v1796_v3 = vrot.slane %v3676_v61, 4  ;;  %v1513_v2 = vsel %vm221_vm0, %v3161_v44, %v1512_v13  ;;  %v4741_v50 = vunpack.i.l.bf16 %v3585_v33 }
 0x10b   : > { %v1324_v19 = vsel %vm221_vm0, 0.0, %v1323_v53  ;;  %v1380_v1 = vsel %vm221_vm0, 0.0, %v1379_v63  ;;  %v1569_v23 = vsel %vm221_vm0, %v3170_v37, %v1568_v15  ;;  %v4675_v48 = vunpack.i.l.bf16 %v3634_v8 }
 0x10c   : > { %v1069_v10 = vrot.slane %v4741_v50, 4  ;;  %2558 = vrot.lane.b32.xlu2 %v2557_v55, %s2818_s8  ;;  %v2567_v60 = vpack.i.bf16 %v1380_v1, %v1324_v19  ;;  %v911_v6 = vrot.slane %v3699_v57, 4  ;;  %v967_v16 = vrot.slane %v3702_v56, 4 }
 0x10d   : > { %v4742_v44 = vunpack.i.h.bf16 %v3634_v8  ;;  %v1956_v55 = vrot.slane %v3546_v41, 4  ;;  %v2577_v53 = vpack.i.bf16 %v3713_v28, %v3696_v49  ;;  %v1521_v63 = vperm.slane %v1513_v2, %v2960_v39 }
 0x10e   : > { %2568 = vrot.lane.b32.xlu0 %v2567_v60, %s2820_s10  ;;  %v1741_v37 = vsel %vm221_vm0, 0.0, %v1740_v35  ;;  %v1797_v15 = vsel %vm221_vm0, 0.0, %v1796_v3  ;;  %v1577_v50 = vperm.slane %v1569_v23, %v2960_v39  ;;  %v4743_v19 = vrot.slane %v3497_v52, 4 }
 0x10f   : > { %v1126_v13 = vsel %vm221_vm0, %v1125_v17, %v4742_v44  ;;  %v1990_v41 = vrot.slane %v3519_v47, 4  ;;  %v698_v1 = vrot.slane %v3327_v32, 4  ;;  %v1936_v35 = vrot.slane %v3563_v12, 4 }
 0x110   : > { %v1979_v17 = vsel %vm221_vm0, %v4743_v19, %v3566_v20  ;;  %2578 = vrot.lane.b32.xlu1 %v2577_v53, %s2817_s7  ;;  %v3754_v3 = vperm.slane %v1126_v13, %v2926_v18  ;;  %v912_v23 = vsel %vm221_vm0, 0.0, %v911_v6  ;;  %v968_v52 = vsel %vm221_vm0, 0.0, %v967_v16 }
 0x111   : > { %v1070_v32 = vsel %vm221_vm0, %v1069_v10, %v4675_v48  ;;  %v2562_v60 = vpack.i.bf16 %v1797_v15, %v1741_v37  ;;  %v3763_v19 = vperm.slane %v1979_v17, %v2960_v39  ;;  %v1093_v53 = vrot.slane %v3716_v25, 4 }
 0x112   : > { %v1149_v12 = vrot.slane %v3641_v9, 4  ;;  %v1957_v13 = vsel %vm221_vm0, %v3435_v26, %v1956_v55  ;;  %v2572_v6 = vpack.i.bf16 %v1577_v50, %v1521_v63  ;;  %v4744_v16 = vunpack.i.l.bf16 %v3620_v11 }
 0x113   : > { %v2587_v20 = vpack.i.bf16 %v968_v52, %v912_v23  ;;  %v1536_v2 = vrot.slane %v1521_v63, 4  ;;  %v1592_v10 = vrot.slane %v1577_v50, 4  ;;  %v1151_v37 = vrot.slane %v3754_v3, 4 }
 0x114   : > { %v1277_v44 = vrot.slane %v4744_v16, 4  ;;  %2563 = vrot.lane.b32.xlu2 %v2562_v60, %s2820_s10  ;;  %v3774_v15 = vperm.slane %v1070_v32, %v2926_v18  ;;  %v728_v17 = vrot.slane %v3512_v31, 4  ;;  %v3779_v48 = vsel %vm221_vm0, %v3596_v40, %v1936_v35 }
 0x115   : > { %v4745_v26 = vunpack.i.h.bf16 %v3620_v11  ;;  %v2002_v16 = vrot.slane %v3763_v19, 4  ;;  %v1742_v23 = vrot.slane %v3441_v58, 4  ;;  %v4746_v63 = vrot.slane %v3457_v46, 4 }
 0x116   : > { %v3790_v52 = vperm.slane %v1957_v13, %v2926_v18  ;;  %2573 = vrot.lane.b32.xlu0 %v2572_v6, %s2818_s8  ;;  %v1798_v40 = vrot.slane %v3453_v21, 4  ;;  %v3796_v11 = vsel %vm221_vm0, %v728_v17, %v3457_v46  ;;  %v4747_v58 = vunpack.i.l.bf16 %v3499_v45 }
 0x117   : > { %v1333_v55 = vrot.slane %v4745_v26, 4  ;;  %v731_v50 = vsel %vm221_vm0, %v3512_v31, %v4746_v63  ;;  %v1537_v31 = vsel %vm221_vm0, 0.0, %v1536_v2  ;;  %v1593_v60 = vsel %vm221_vm0, 0.0, %v1592_v10 }
 0x118   : > { %v3799_v35 = vperm.slane %v731_v50, %v2960_v39  ;;  %v1278_v32 = vsel %vm221_vm0, %v4747_v58, %v1277_v44  ;;  %2588 = vrot.lane.b32.xlu1 %v2587_v20, %s2820_s10  ;;  %v4748_v21 = vrot.slane %v3494_v24, 4  ;;  %v3813_v6 = vsel %vm221_vm0, 0.0, %v698_v1 }
 0x119   : > { %v4750_v44 = vrot.slane %v3486_v54, 4  ;;  %v4751_v20 = vunpack.i.h.bf16 %v3499_v45  ;;  %v2003_v26 = vsel %vm221_vm0, 0.0, %v2002_v16  ;;  %v2004_v63 = vrot.slane %v3608_v36, 4 }
 0x11a   : > { %v685_v13 = vsel %vm221_vm0, %v4748_v21, %v3465_v43  ;;  %v754_v46 = vrot.slane %v3799_v35, 4  ;;  %v3831_v1 = vperm.slane %v1278_v32, %v2926_v18  ;;  %v4753_v21 = vrot.slane %v3465_v43, 4  ;;  %v4769_v32 = vld [vmem:[#allocation7_spill] sm:$0xff] }
 0x11b   : > { %v3816_v17 = vperm.slane %v685_v13, %v2960_v39  ;;  %v741_v2 = vsel %vm221_vm0, %v4750_v44, %v3461_v4  ;;  %v1334_v10 = vsel %vm221_vm0, %v4751_v20, %v1333_v55  ;;  %v4754_v55 = vrot.slane %v3461_v4, 4  ;;  %v4766_v20 = vld [vmem:[#allocation6_spill] sm:$0xff] }
 0x11c   : > { %v3828_v50 = vperm.slane %v741_v2, %v2960_v39  ;;  %v3834_v58 = vsel %vm221_vm0, 0.0, %v754_v46  ;;  %v687_v45 = vsel %vm221_vm0, %v3494_v24, %v4753_v21  ;;  %2039 = vrot.lane.b32.xlu2 %v2003_v26, %s2820_s10  ;;  %v2602_v36 = vpack.i.bf16 %v1593_v60, %v1537_v31 }
 0x11d   : > { %4749 = vst [vmem:[#allocation36_spill] sm:$0xff] %v3816_v17  ;;  %v743_v16 = vsel %vm221_vm0, %v3486_v54, %v4754_v55  ;;  %v3850_v46 = vperm.slane %v687_v45, %v2960_v39  ;;  %v1325_v43 = vrot.slane %v3684_v14, 4  ;;  %v1381_v24 = vrot.slane %v3687_v27, 4  ;;  %v4778_v55 = vld [vmem:[#allocation19_spill] sm:$0xff] }
 0x11e   : > { %4752 = vst [vmem:[#allocation37_spill] sm:$0xff] %v3828_v50  ;;  %v1948_v4 = vrot.slane %v3527_v29, 4  ;;  %v3856_v54 = vperm.slane %v743_v16, %v2960_v39  ;;  %v3859_v31 = vperm.slane %v1334_v10, %v2926_v18  ;;  %v2005_v60 = vsel %vm221_vm0, 0.0, %v2004_v63 }
 0x11f   : > { %4755 = vst [vmem:[#allocation38_spill] sm:$0xff] %v3850_v46  ;;  %v1743_v44 = vsel %vm221_vm0, 0.0, %v1742_v23  ;;  %v1094_v2 = vsel %vm221_vm0, %v1093_v53, %v3774_v15  ;;  %2047 = vrot.lane.b32.xlu0 %v2005_v60, %s2819_s9  ;;  %v1799_v14 = vsel %vm221_vm0, 0.0, %v1798_v40  ;;  %v702_v27 = vrot.slane %v3850_v46, 4  ;;  %v4781_v46 = vld [vmem:[#allocation21_spill] sm:$0xff] }
 0x120   : > { %4756 = vst [vmem:[#allocation39_spill] sm:$0xff] %v3856_v54  ;;  %v700_v29 = vrot.slane %v3816_v17, 4  ;;  %v1095_v10 = vrot.slane %v3774_v15, 4  ;;  %2603 = vrot.lane.b32.xlu1 %v2602_v36, %s2819_s9  ;;  %v1991_v53 = vsel %vm221_vm0, %v1990_v41, %v3790_v52  ;;  %v4757_v23 = vrot.slane %v3556_v51, 4  ;;  %v4803_v17 = vld [vmem:[#allocation25_spill] sm:$0xff] }
 0x121   : > { %v758_v26 = vrot.slane %v3856_v54, 4  ;;  %v1326_v63 = vsel %vm221_vm0, 0.0, %v1325_v43  ;;  %v1382_v21 = vsel %vm221_vm0, 0.0, %v1381_v24  ;;  %v3885_v15 = vperm.slane %v1094_v2, %v2960_v39 }
 0x122   : > { %v1312_v40 = vsel %vm221_vm0, %v4757_v23, %v3831_v1  ;;  %v756_v45 = vrot.slane %v3828_v50, 4  ;;  %v2582_v16 = vpack.i.bf16 %v1799_v14, %v1743_v44  ;;  %v4759_v41 = vrot.slane %v3553_v30, 4 }
 0x123   : > { %4758 = vst [vmem:[#allocation40_spill] sm:$0xff] %v3885_v15  ;;  %v3894_v60 = vsel %vm221_vm0, 0.0, %v702_v27  ;;  %v1949_v24 = vsel %vm221_vm0, 0.0, %v1948_v4  ;;  %v1150_v2 = vsel %vm221_vm0, %v1149_v12, %v3754_v3  ;;  %v3903_v23 = vsel %vm221_vm0, 0.0, %v700_v29  ;;  %v4767_v29 = vld [vmem:[#allocation5_spill] sm:$0xff]  ;;  %v4772_v3 = vld [vmem:[#allocation28_spill] sm:$0xff] }
 0x124   : > { %v1368_v36 = vsel %vm221_vm0, %v4759_v41, %v3859_v31  ;;  %4760 = vst [vmem:[#allocation41_spill] sm:$0xff] %v3894_v60  ;;  %2583 = vrot.lane.b32.xlu2 %v2582_v16, %s2819_s9  ;;  %v2597_v44 = vpack.i.bf16 %v1382_v21, %v1326_v63  ;;  %v3907_v14 = vperm.slane %v1991_v53, %v2960_v39  ;;  %v3913_v41 = vsel %vm221_vm0, 0.0, %v758_v26  ;;  %v3935_v21 = vpop.permute.xlu2 %2523 }
 0x125   : > { %4761 = vst [vmem:[#allocation42_spill] sm:$0xff] %v3903_v23  ;;  %v3910_v27 = vperm.slane %v1312_v40, %v2960_v39  ;;  %v3916_v4 = vperm.slane %v1368_v36, %v2960_v39  ;;  %v1117_v12 = vrot.slane %v3885_v15, 4  ;;  %v3922_v16 = vsel %vm221_vm0, 0.0, %v756_v45 }
 0x126   : > { %4762 = vst [vmem:[#allocation43_spill] sm:$0xff] %v3913_v41  ;;  %v3926_v53 = vperm.slane %v3706_v5, %v2960_v39  ;;  %v3929_v40 = vperm.slane %v1150_v2, %v2960_v39  ;;  %v1096_v26 = vsel %vm221_vm0, %v3716_v25, %v1095_v10  ;;  %v889_v45 = vrot.slane %v3573_v0, 4 }
 0x127   : > { %4763 = vst [vmem:[#allocation44_spill] sm:$0xff] %v3922_v16  ;;  %2598 = vrot.lane.b32.xlu0 %v2597_v44, %s2819_s9  ;;  %v945_v36 = vrot.slane %v3591_v42, 4  ;;  %v4765_v5 = vrot.slane %v3056_v7, 4  ;;  %v4768_v13 = vrot.slane %v4767_v29, 4  ;;  %v1152_v0 = vsel %vm221_vm0, %v3641_v9, %v1151_v37 }
 0x128   : > { %4764 = vst [vmem:[#allocation45_spill] sm:$0xff] %v3929_v40  ;;  %2051 = vrot.lane.b32.xlu1 %v3907_v14, %s2817_s7  ;;  %v2622_v44 = vpack.i.bf16 %v3916_v4, %v3910_v27  ;;  %v1173_v43 = vrot.slane %v3929_v40, 4  ;;  %v4780_v40 = vld [vmem:[#allocation20_spill] sm:$0xff]  ;;  %v4782_v54 = vunpack.i.l.bf16 %v4781_v46  ;;  %v4784_v16 = vunpack.i.h.bf16 %v4781_v46 }
 0x129   : > { %v1489_v2 = vsel %vm221_vm0, %v4766_v20, %v4765_v5  ;;  %v1545_v25 = vsel %vm221_vm0, %v4769_v32, %v4768_v13  ;;  %v4770_v20 = vld [vmem:[#allocation27_spill] sm:$0xff]  ;;  %v1118_v32 = vsel %vm221_vm0, 0.0, %v1117_v12  ;;  %v4771_v13 = vld [vmem:[#allocation29_spill] sm:$0xff]  ;;  %v946_v5 = vsel %vm221_vm0, %v4772_v3, %v945_v36 }
 0x12a   : > { %v3955_v42 = vperm.slane %v1489_v2, %v2926_v18  ;;  %v3958_v7 = vperm.slane %v1545_v25, %v2926_v18  ;;  %v1578_v10 = vrot.slane %v4770_v20, 4  ;;  %v890_v29 = vsel %vm221_vm0, %v4771_v13, %v889_v45  ;;  %v4773_v2 = vld [vmem:[#allocation26_spill] sm:$0xff] }
 0x12b   : > { %v3969_v9 = vperm.slane %v890_v29, %v2960_v39  ;;  %v3972_v37 = vperm.slane %v946_v5, %v2960_v39  ;;  %v4774_v25 = vrot.slane %v4773_v2, 4  ;;  %v1786_v46 = vrot.slane %v3631_v62, 4 }
 0x12c   : > { %v1579_v12 = vsel %vm221_vm0, %v1578_v10, %v3958_v7  ;;  %2019 = vrot.lane.b32.xlu2 %v1949_v24, %s2819_s9  ;;  %v3992_v10 = vpop.permute.xlu1 %2513 }
 0x12d   : > { %v1523_v63 = vsel %vm221_vm0, %v4774_v25, %v3955_v42  ;;  %v3985_v36 = vperm.slane %v1579_v12, %v2960_v39  ;;  %v913_v13 = vrot.slane %v3969_v9, 4  ;;  %v969_v29 = vrot.slane %v3972_v37, 4  ;;  %4775 = vst [vmem:[#allocation6_spill] sm:$0xff] %v3992_v10  ;;  %v4776_v25 = vld [vmem:[#allocation18_spill] sm:$0xff] }
 0x12e   : > { %v3982_v45 = vperm.slane %v1523_v63, %v2960_v39  ;;  %v4777_v12 = vunpack.i.l.bf16 %v4776_v25  ;;  %v4779_v24 = vunpack.i.h.bf16 %v4776_v25  ;;  %v4020_v25 = vpop.permute.xlu2 %765 }
 0x12f   : > { %v1594_v63 = vrot.slane %v3985_v36, 4  ;;  %v4005_v56 = vsel %vm221_vm0, 0.0, %v913_v13  ;;  %v4008_v3 = vsel %vm221_vm0, 0.0, %v969_v29  ;;  %2023 = vrot.lane.b32.xlu0 %v3926_v53, %s2817_s7 }
 0x130   : > { %v1538_v5 = vrot.slane %v3982_v45, 4  ;;  %v400_v15 = vsel %vm399_vm8, %v4778_v55, %v4777_v12  ;;  %v408_v57 = vsel %vm399_vm8, %v4780_v40, %v4779_v24  ;;  %v1174_v40 = vsel %vm221_vm0, 0.0, %v1173_v43  ;;  %2623 = vrot.lane.b32.xlu1 %v2622_v44, %s2817_s7 }
 0x131   : > { %v4013_v23 = vsel %vm401_vm9, %v400_v15, %v4782_v54  ;;  %v4018_v55 = vsel %vm401_vm9, %v408_v57, %v4784_v16  ;;  %v4031_v54 = vsel %vm221_vm0, 0.0, %v1594_v63  ;;  %v4036_v57 = vperm.slane %v1096_v26, %v2960_v39 }
 0x132   : > { %4783 = vst [vmem:[#allocation5_spill] sm:$0xff] %v4013_v23  ;;  %v4028_v29 = vsel %vm221_vm0, 0.0, %v1538_v5  ;;  %v4043_v16 = vperm.slane %v1152_v0, %v2960_v39  ;;  %v1950_v5 = vrot.slane %v3926_v53, 4  ;;  %v4786_v63 = vrot.slane %v3831_v1, 4 }
 0x133   : > { %4785 = vst [vmem:[#allocation7_spill] sm:$0xff] %v4018_v55  ;;  %v4787_v44 = vrot.slane %v3859_v31, 4  ;;  %v2592_v12 = vpack.i.bf16 %v1174_v40, %v1118_v32  ;;  %v1744_v24 = vrot.slane %v3696_v49, 4  ;;  %v1800_v53 = vrot.slane %v3713_v28, 4  ;;  %v4789_v31 = vld [vmem:[#allocation30_spill] sm:$0xff]  ;;  %v4794_v49 = vld [vmem:[#allocation8_spill] sm:$0xff] }
 0x134   : > { %v1314_v62 = vsel %vm221_vm0, %v3556_v51, %v4786_v63  ;;  %v4788_v1 = vrot.slane %v3613_v38, 4  ;;  %v4790_v63 = vld [vmem:[#allocation11_spill] sm:$0xff]  ;;  %v4791_v28 = vld [vmem:[#allocation10_spill] sm:$0xff]  ;;  %v2617_v38 = vpack.i.bf16 %v4043_v16, %v4036_v57 }
 0x135   : > { %v1370_v26 = vsel %vm221_vm0, %v3553_v30, %v4787_v44  ;;  %v4056_v43 = vperm.slane %v1314_v62, %v2960_v39  ;;  %2593 = vrot.lane.b32.xlu2 %v2592_v12, %s2820_s10  ;;  %v1787_v30 = vsel %vm221_vm0, %v4789_v31, %v1786_v46  ;;  %v921_v62 = vrot.slane %v4790_v63, 4 }
 0x136   : > { %v4059_v0 = vperm.slane %v1370_v26, %v2960_v39  ;;  %v1731_v51 = vsel %vm221_vm0, %v3507_v34, %v4788_v1  ;;  %v865_v44 = vrot.slane %v4791_v28, 4  ;;  %v1951_v34 = vsel %vm221_vm0, 0.0, %v1950_v5  ;;  %v2534_v15 = vpop.permute.xlu2 %2533 }
 0x137   : > { %v1329_v32 = vrot.slane %v4056_v43, 4  ;;  %v1745_v26 = vsel %vm221_vm0, 0.0, %v1744_v24  ;;  %2618 = vrot.lane.b32.xlu0 %v2617_v38, %s2818_s8  ;;  %v4086_v1 = vpop.permute.xlu1 %2528  ;;  %v1801_v31 = vsel %vm221_vm0, 0.0, %v1800_v53  ;;  %v4090_v63 = vperm.slane %v1731_v51, %v2960_v39  ;;  %v4793_v24 = vld [vmem:[#allocation9_spill] sm:$0xff]  ;;  %v4795_v38 = vld [vmem:[#allocation14_spill] sm:$0xff]  ;;  %v4796_v53 = vld [vmem:[#allocation15_spill] sm:$0xff] }
 0x138   : > { %v1385_v40 = vrot.slane %v4059_v0, 4  ;;  %4792 = vst [vmem:[#allocation27_spill] sm:$0xff] %v4086_v1  ;;  %v4093_v28 = vperm.slane %v1787_v30, %v2960_v39  ;;  %2027 = vrot.lane.b32.xlu1 %v1951_v34, %s2823_s13  ;;  %v866_v13 = vsel %vm221_vm0, %v4795_v38, %v865_v44  ;;  %v922_v51 = vsel %vm221_vm0, %v4796_v53, %v921_v62  ;;  %v4797_v1 = vld [vmem:[#allocation31_spill] sm:$0xff] }
 0x139   : > { %v4080_v46 = vsel %vm221_vm0, 0.0, %v1329_v32  ;;  %v933_v32 = vrot.slane %v4793_v24, 4  ;;  %v2536_v55 = vunpack.i.h.bf16 %v2534_v15  ;;  %v2535_v23 = vunpack.i.l.bf16 %v2534_v15  ;;  %v4800_v15 = vld [vmem:[#allocation12_spill] sm:$0xff] }
 0x13a   : > { %v4083_v12 = vsel %vm221_vm0, 0.0, %v1385_v40  ;;  %v877_v40 = vrot.slane %v4794_v49, 4  ;;  %v2607_v30 = vpack.i.bf16 %v1801_v31, %v1745_v26  ;;  %v4798_v60 = vunpack.i.h.bf16 %v4797_v1  ;;  %v2519_v44 = vpop.permute.xlu0 %2518 }
 0x13b   : > { %v4799_v5 = vunpack.i.l.bf16 %v4797_v1  ;;  %v2632_v49 = vpack.i.bf16 %v4093_v28, %v4090_v63  ;;  %v4112_v34 = vperm.slane %v3796_v11, %v2960_v39  ;;  %v4116_v62 = vperm.slane %v866_v13, %v2926_v18  ;;  %v4801_v1 = vld [vmem:[#allocation13_spill] sm:$0xff] }
 0x13c   : > { %v1139_v41 = vrot.slane %v4798_v60, 4  ;;  %v878_v26 = vsel %vm221_vm0, %v4800_v15, %v877_v40  ;;  %v4121_v60 = vperm.slane %v922_v51, %v2926_v18  ;;  %v934_v31 = vsel %vm221_vm0, %v4801_v1, %v933_v32  ;;  %v4804_v15 = vld [vmem:[#allocation23_spill] sm:$0xff]  ;;  %v4805_v1 = vld [vmem:[#allocation22_spill] sm:$0xff] }
 0x13d   : > { %v1083_v24 = vrot.slane %v4799_v5, 4  ;;  %2608 = vrot.lane.b32.xlu2 %v2607_v30, %s2823_s13  ;;  %v2521_v5 = vunpack.i.h.bf16 %v2519_v44  ;;  %v2520_v38 = vunpack.i.l.bf16 %v2519_v44  ;;  %v4126_v11 = vperm.slane %v878_v26, %v2926_v18 }
 0x13e   : > { %v4129_v53 = vperm.slane %v934_v31, %v2926_v18  ;;  %v4802_v13 = vunpack.i.h.bf16 %v3634_v8  ;;  %v617_v40 = vsel %vm389_vm3, %v4803_v17, %v2536_v55  ;;  %v610_v51 = vsel %vm389_vm3, %v4804_v15, %v2535_v23 }
 0x13f   : > { %v611_v50 = vsel %vm391_vm4, %v610_v51, %v2520_v38  ;;  %v618_v32 = vsel %vm391_vm4, %v617_v40, %v2521_v5  ;;  %2633 = vrot.lane.b32.xlu0 %v2632_v49, %s2821_s11  ;;  %v899_v44 = vrot.slane %v4126_v11, 4  ;;  %v4806_v31 = vunpack.i.l.bf16 %v4805_v1  ;;  %v2539_v55 = vpop.permute.xlu1 %2538 }
 0x140   : > { %v1127_v30 = vrot.slane %v4802_v13, 4  ;;  %v955_v26 = vrot.slane %v4129_v53, 4  ;;  %v4807_v10 = vunpack.i.h.bf16 %v4805_v1  ;;  %v4808_v23 = vpack.i.bf16 %v4008_v3, %v4005_v56 }
 0x141   : > { %v1084_v13 = vsel %vm221_vm0, %v4806_v31, %v1083_v24  ;;  %v752_v49 = vrot.slane %v4112_v34, 4  ;;  %v2541_v5 = vunpack.i.h.bf16 %v2539_v55  ;;  %v2540_v38 = vunpack.i.l.bf16 %v2539_v55 }
 0x142   : > { %v1140_v17 = vsel %vm221_vm0, %v4807_v10, %v1139_v41  ;;  %2638 = vrot.lane.b32.xlu1 %v4808_v23, %s2819_s9  ;;  %v900_v40 = vsel %vm221_vm0, %v899_v44, %v4116_v62  ;;  %v956_v24 = vsel %vm221_vm0, %v955_v26, %v4121_v60  ;;  %v2526_v15 = vunpack.i.h.bf16 %v3935_v21  ;;  %v2544_v55 = vpop.permute.xlu0 %2543 }
 0x143   : > { %v2525_v41 = vunpack.i.l.bf16 %v3935_v21  ;;  %v4160_v10 = vperm.slane %v900_v40, %v2960_v39  ;;  %v4163_v56 = vperm.slane %v956_v24, %v2960_v39  ;;  %v4809_v3 = vunpack.i.h.bf16 %v3585_v33 }
 0x144   : > { %v4810_v1 = vunpack.i.l.bf16 %v3634_v8  ;;  %v612_v31 = vsel %vm393_vm5, %v611_v50, %v2540_v38  ;;  %v619_v26 = vsel %vm393_vm5, %v618_v32, %v2541_v5  ;;  %v4811_v40 = vpack.i.bf16 %v3972_v37, %v3969_v9 }
 0x145   : > { %v1128_v51 = vsel %vm221_vm0, %v4809_v3, %v1127_v30  ;;  %v613_v21 = vsel %vm395_vm6, %v612_v31, %v2525_v41  ;;  %v620_v23 = vsel %vm395_vm6, %v619_v26, %v2526_v15  ;;  %v2662_v30 = vpack.i.bf16 %v4163_v56, %v4160_v10 }
 0x146   : > { %v1071_v44 = vrot.slane %v4810_v1, 4  ;;  %2613 = vrot.lane.b32.xlu2 %v4811_v40, %s2818_s8  ;;  %v1524_v8 = vrot.slane %v3955_v42, 4  ;;  %v2546_v24 = vunpack.i.h.bf16 %v2544_v55  ;;  %v2545_v3 = vunpack.i.l.bf16 %v2544_v55 }
 0x147   : > { %v1327_v50 = vrot.slane %v3910_v27, 4  ;;  %v1580_v32 = vrot.slane %v3958_v7, 4  ;;  %v1992_v5 = vrot.slane %v3790_v52, 4  ;;  %v753_v38 = vsel %vm221_vm0, 0.0, %v752_v49 }
 0x148   : > { %v1383_v15 = vrot.slane %v3916_v4, 4  ;;  %v1525_v9 = vsel %vm221_vm0, %v4773_v2, %v1524_v8  ;;  %v4189_v37 = vsel %vm397_vm7, %v613_v21, %v2545_v3  ;;  %v4192_v42 = vsel %vm397_vm7, %v620_v23, %v2546_v24  ;;  %789 = vrot.lane.b32.xlu0 %v753_v38, %s2820_s10 }
 0x149   : > { %v4196_v27 = vperm.slane %v1525_v9, %v2960_v39  ;;  %v1581_v52 = vsel %vm221_vm0, %v4770_v20, %v1580_v32  ;;  %v4812_v7 = vunpack.i.l.bf16 %v3585_v33  ;;  %v4813_v2 = vpack.i.bf16 %v4031_v54, %v4028_v29  ;;  %v762_v3 = vpop.permute.xlu1 %761 }
 0x14a   : > { %v4208_v49 = vperm.slane %v1581_v52, %v2960_v39  ;;  %v915_v41 = vrot.slane %v4160_v10, 4  ;;  %v971_v1 = vrot.slane %v4163_v56, 4  ;;  %v4213_v31 = vperm.slane %v1084_v13, %v2926_v18 }
 0x14b   : > { %v1072_v4 = vsel %vm221_vm0, %v4812_v7, %v1071_v44  ;;  %2653 = vrot.lane.b32.xlu1 %v4813_v2, %s2823_s13  ;;  %v4216_v20 = vperm.slane %v1140_v17, %v2926_v18  ;;  %v1328_v33 = vsel %vm221_vm0, 0.0, %v1327_v50  ;;  %v1384_v44 = vsel %vm221_vm0, 0.0, %v1383_v15 }
 0x14c   : > { %v2677_v29 = vpack.i.bf16 %v4208_v49, %v4196_v27  ;;  %v916_v54 = vsel %vm221_vm0, 0.0, %v915_v41  ;;  %v972_v26 = vsel %vm221_vm0, 0.0, %v971_v1  ;;  %v4225_v55 = vperm.slane %v1128_v51, %v2926_v18 }
 0x14d   : > { %v4228_v13 = vperm.slane %v1072_v4, %v2926_v18  ;;  %v1993_v17 = vsel %vm221_vm0, %v3519_v47, %v1992_v5  ;;  %v2687_v21 = vpack.i.bf16 %v972_v26, %v916_v54  ;;  %v4814_v23 = vpack.i.bf16 %v3985_v36, %v3982_v45  ;;  %v4815_v18 = vld [vmem:[#allocation24_spill] sm:$0xff]  ;;  %v4282_v26 = vpop.permute.xlu2 %2548 }
 0x14e   : > { %v1105_v40 = vrot.slane %v4213_v31, 4  ;;  %v1161_v8 = vrot.slane %v4216_v20, 4  ;;  %v2647_v24 = vpack.i.bf16 %v1384_v44, %v1328_v33  ;;  %v4239_v51 = vperm.slane %v1993_v17, %v2960_v39 }
 0x14f   : > { %2628 = vrot.lane.b32.xlu2 %v4814_v23, %s2817_s7  ;;  %v816_v50 = vsel %vm389_vm3, %v4815_v18, %v762_v3  ;;  %v2006_v47 = vrot.slane %v3907_v14, 4  ;;  %v1540_v5 = vrot.slane %v4196_v27, 4  ;;  %v1596_v38 = vrot.slane %v4208_v49, 4 }
 0x150   : > { %2648 = vrot.lane.b32.xlu0 %v2647_v24, %s2823_s13  ;;  %v1106_v45 = vsel %vm221_vm0, %v1105_v40, %v4228_v13  ;;  %v1162_v36 = vsel %vm221_vm0, %v1161_v8, %v4225_v55  ;;  %v4251_v32 = vsel %vm391_vm4, %v816_v50, %v4020_v25  ;;  %v1119_v9 = vrot.slane %v4036_v57, 4 }
 0x151   : > { %v4258_v15 = vperm.slane %v1106_v45, %v2960_v39  ;;  %v4261_v14 = vperm.slane %v1162_v36, %v2960_v39  ;;  %v2007_v52 = vsel %vm221_vm0, 0.0, %v2006_v47  ;;  %v1175_v25 = vrot.slane %v4043_v16, 4 }
 0x152   : > { %v1541_v7 = vsel %vm221_vm0, 0.0, %v1540_v5  ;;  %v1597_v4 = vsel %vm221_vm0, 0.0, %v1596_v38  ;;  %v1945_v2 = vperm.slane %v3779_v48, %v2960_v39  ;;  %v1120_v57 = vsel %vm221_vm0, 0.0, %v1119_v9 }
 0x153   : > { %2059 = vrot.lane.b32.xlu1 %v4239_v51, %s2821_s11  ;;  %v2702_v27 = vpack.i.bf16 %v1597_v4, %v1541_v7  ;;  %v2667_v49 = vpack.i.bf16 %v4261_v14, %v4258_v15  ;;  %v1176_v41 = vsel %vm221_vm0, 0.0, %v1175_v25  ;;  %v1746_v1 = vrot.slane %v4090_v63, 4 }
 0x154   : > { %v2642_v16 = vpack.i.bf16 %v1176_v41, %v1120_v57  ;;  %v1952_v33 = vrot.slane %v1945_v2, 4  ;;  %v1802_v44 = vrot.slane %v4093_v28, 4  ;;  %v901_v48 = vrot.slane %v4116_v62, 4 }
 0x155   : > { %v957_v54 = vrot.slane %v4121_v60, 4  ;;  %v1747_v17 = vsel %vm221_vm0, 0.0, %v1746_v1  ;;  %v1163_v18 = vrot.slane %v4225_v55, 4  ;;  %v1107_v50 = vrot.slane %v4228_v13, 4 }
 0x156   : > { %v902_v23 = vsel %vm221_vm0, %v4126_v11, %v901_v48  ;;  %v1953_v63 = vsel %vm221_vm0, 0.0, %v1952_v33  ;;  %v1803_v28 = vsel %vm221_vm0, 0.0, %v1802_v44  ;;  %v4816_v45 = vpack.i.bf16 %v3834_v58, %v3813_v6 }
 0x157   : > { %2055 = vrot.lane.b32.xlu2 %v2007_v52, %s2823_s13  ;;  %v958_v40 = vsel %vm221_vm0, %v4129_v53, %v957_v54  ;;  %v910_v62 = vperm.slane %v902_v23, %v2960_v39  ;;  %v2657_v11 = vpack.i.bf16 %v1803_v28, %v1747_v17  ;;  %v1164_v55 = vsel %vm221_vm0, %v4216_v20, %v1163_v18 }
 0x158   : > { %2031 = vrot.lane.b32.xlu0 %v1945_v2, %s2821_s11  ;;  %v966_v60 = vperm.slane %v958_v40, %v2960_v39  ;;  %v1172_v52 = vperm.slane %v1164_v55, %v2960_v39  ;;  %v4817_v20 = vpack.i.bf16 %v4059_v0, %v4056_v43  ;;  %v1121_v57 = vrot.slane %v4258_v15, 4 }
 0x159   : > { %v917_v53 = vrot.slane %v910_v62, 4  ;;  %v1177_v41 = vrot.slane %v4261_v14, 4 }
 0x15a   : > { %v2712_v8 = vpack.i.bf16 %v966_v60, %v910_v62  ;;  %v973_v24 = vrot.slane %v966_v60, 4  ;;  %v1179_v2 = vrot.slane %v1172_v52, 4  ;;  %v1122_v14 = vsel %vm221_vm0, 0.0, %v1121_v57 }
 0x15b   : > { %2668 = vrot.lane.b32.xlu1 %v2667_v49, %s2817_s7  ;;  %v4303_v10 = vsel %vm221_vm0, 0.0, %v917_v53  ;;  %v1178_v54 = vsel %vm221_vm0, 0.0, %v1177_v41  ;;  %v4830_v41 = vld [vmem:[#allocation44_spill] sm:$0xff] }
 0x15c   : > { %v4306_v56 = vsel %vm221_vm0, 0.0, %v973_v24  ;;  %v2554_v47 = vpop.permute.xlu0 %2553  ;;  %v2692_v60 = vpack.i.bf16 %v1178_v54, %v1122_v14 }
 0x15d   : > { %v2556_v38 = vunpack.i.h.bf16 %v2554_v47  ;;  %v2555_v13 = vunpack.i.l.bf16 %v2554_v47 }
 0x15f   : > { %2643 = vrot.lane.b32.xlu2 %v2642_v16, %s2819_s9  ;;  %v4819_v16 = vld [vmem:[#allocation32_spill] sm:$0xff] }
 0x160   : > { %2663 = vrot.lane.b32.xlu0 %v2662_v30, %s2817_s7  ;;  %v2727_v30 = vpack.i.bf16 %v4306_v56, %v4303_v10  ;;  %v4824_v10 = vld [vmem:[#allocation37_spill] sm:$0xff]  ;;  %v4825_v56 = vld [vmem:[#allocation36_spill] sm:$0xff] }
 0x163   : > { %2035 = vrot.lane.b32.xlu1 %v1953_v63, %s2822_s12 }
 0x164   : > { %v2016_v43 = vpop.permute.xlu0 %2015 }
 0x166   : > { %v4299_v3 = vpop.permute.xlu2 %2558 }
 0x167   : > { %2658 = vrot.lane.b32.xlu2 %v2657_v11, %s2822_s12  ;;  %v2561_v11 = vunpack.i.h.bf16 %v4299_v3 }
 0x168   : > { %2678 = vrot.lane.b32.xlu0 %v2677_v29, %s2821_s11 }
 0x16b   : > { %2688 = vrot.lane.b32.xlu1 %v2687_v21, %s2823_s13  ;;  %v1108_v21 = vsel %vm221_vm0, %v4213_v31, %v1107_v50  ;;  %v4820_v50 = vld [vmem:[#allocation33_spill] sm:$0xff] }
 0x16c   : > { %v1116_v58 = vperm.slane %v1108_v21, %v2960_v39  ;;  %v2008_v39 = vrot.slane %v4239_v51, 4  ;;  %v1180_v51 = vsel %vm221_vm0, 0.0, %v1179_v2 }
 0x16e   : > { %v2564_v29 = vpop.permute.xlu2 %2563  ;;  %v2717_v4 = vpack.i.bf16 %v1172_v52, %v1116_v58 }
 0x16f   : > { %793 = vrot.lane.b32.xlu2 %v3799_v35, %s2818_s8  ;;  %v2566_v36 = vunpack.i.h.bf16 %v2564_v29  ;;  %v2565_v5 = vunpack.i.l.bf16 %v2564_v29 }
 0x170   : > { %2683 = vrot.lane.b32.xlu0 %v4816_v45, %s2819_s9 }
 0x171   : > { %v1867_v35 = vsel %vm389_vm3, %v3676_v61, %v2566_v36  ;;  %v1860_v9 = vsel %vm389_vm3, %v3673_v22, %v2565_v5  ;;  %v4818_v61 = vpack.i.bf16 %v4083_v12, %v4080_v46  ;;  %v2009_v12 = vsel %vm221_vm0, 0.0, %v2008_v39 }
 0x172   : > { %v2044_v6 = vpop.permute.xlu1 %2043  ;;  %v1861_v31 = vsel %vm391_vm4, %v1860_v9, %v2555_v13  ;;  %v1868_v25 = vsel %vm391_vm4, %v1867_v35, %v2556_v38 }
 0x173   : > { %2703 = vrot.lane.b32.xlu1 %v2702_v27, %s2822_s12  ;;  %v1123_v27 = vrot.slane %v1116_v58, 4  ;;  %v4822_v58 = vld [vmem:[#allocation17_spill] sm:$0xff] }
 0x176   : > { %v2040_v7 = vpop.permute.xlu2 %2039 }
 0x177   : > { %2673 = vrot.lane.b32.xlu2 %v4817_v20, %s2821_s11  ;;  %v2073_v22 = vsel %vm389_vm3, %v3763_v19, %v2040_v7  ;;  %v1124_v19 = vsel %vm221_vm0, 0.0, %v1123_v27 }
 0x178   : > { %2698 = vrot.lane.b32.xlu0 %v4818_v61, %s2822_s12  ;;  %v2074_v49 = vsel %vm391_vm4, %v2073_v22, %v2044_v6  ;;  %v2732_v44 = vpack.i.bf16 %v1180_v51, %v1124_v19  ;;  %v4827_v61 = vld [vmem:[#allocation43_spill] sm:$0xff]  ;;  %v4828_v22 = vld [vmem:[#allocation41_spill] sm:$0xff] }
 0x179   : > { %v4829_v39 = vpack.i.bf16 %v4827_v61, %v4828_v22 }
 0x17a   : > { %v2012_v0 = vpop.permute.xlu1 %2011 }
 0x17b   : > { %2718 = vrot.lane.b32.xlu1 %v2717_v4, %s2821_s11  ;;  %v2066_v46 = vsel %vm389_vm3, %v4819_v16, %v2012_v0  ;;  %v4831_v16 = vld [vmem:[#allocation42_spill] sm:$0xff] }
 0x17c   : > { %v2067_v1 = vsel %vm391_vm4, %v2066_v46, %v2016_v43  ;;  %v4832_v46 = vpack.i.bf16 %v4830_v41, %v4831_v16  ;;  %v4842_v16 = vld [vmem:[#allocation40_spill] sm:$0xff] }
 0x17e   : > { %v2584_v33 = vpop.permute.xlu2 %2583 }
 0x17f   : > { %2063 = vrot.lane.b32.xlu2 %v2009_v12, %s2822_s12  ;;  %v2586_v15 = vunpack.i.h.bf16 %v2584_v33  ;;  %v2585_v48 = vunpack.i.l.bf16 %v2584_v33 }
 0x180   : > { %2713 = vrot.lane.b32.xlu0 %v2712_v8, %s2821_s11  ;;  %v2569_v40 = vpop.permute.xlu0 %2568  ;;  %v2560_v8 = vunpack.i.l.bf16 %v4299_v3  ;;  %v4821_v3 = vld [vmem:[#allocation6_spill] sm:$0xff] }
 0x181   : > { %v1862_v17 = vsel %vm393_vm5, %v1861_v31, %v2585_v48  ;;  %v1869_v23 = vsel %vm393_vm5, %v1868_v25, %v2586_v15  ;;  %v2571_v63 = vunpack.i.h.bf16 %v2569_v40  ;;  %v2570_v28 = vunpack.i.l.bf16 %v2569_v40  ;;  %v4823_v31 = vld [vmem:[#allocation16_spill] sm:$0xff] }
 0x182   : > { %v2579_v62 = vpop.permute.xlu1 %2578  ;;  %v2516_v55 = vunpack.i.h.bf16 %v4821_v3  ;;  %v2515_v38 = vunpack.i.l.bf16 %v4821_v3 }
 0x183   : > { %2733 = vrot.lane.b32.xlu1 %v2732_v44, %s2822_s12  ;;  %v2581_v53 = vunpack.i.h.bf16 %v2579_v62  ;;  %v2580_v24 = vunpack.i.l.bf16 %v2579_v62  ;;  %v1450_v18 = vsel %vm389_vm3, %v3693_v59, %v2571_v63  ;;  %v1443_v47 = vsel %vm389_vm3, %v4820_v50, %v2570_v28  ;;  %v4833_v28 = vld [vmem:[#allocation39_spill] sm:$0xff]  ;;  %v4834_v62 = vld [vmem:[#allocation38_spill] sm:$0xff] }
 0x184   : > { %v1444_v36 = vsel %vm391_vm4, %v1443_v47, %v2560_v8  ;;  %v1451_v5 = vsel %vm391_vm4, %v1450_v18, %v2561_v11  ;;  %v1661_v52 = vsel %vm389_vm3, %v4822_v58, %v2516_v55  ;;  %v1654_v25 = vsel %vm389_vm3, %v4823_v31, %v2515_v38  ;;  %v4837_v47 = vld [vmem:[#allocation35_spill] sm:$0xff] }
 0x185   : > { %v1863_v29 = vsel %vm395_vm6, %v1862_v17, %v2580_v24  ;;  %v1870_v45 = vsel %vm395_vm6, %v1869_v23, %v2581_v53  ;;  %v4836_v24 = vld [vmem:[#allocation27_spill] sm:$0xff] }
 0x186   : > { %v2020_v21 = vpop.permute.xlu2 %2019  ;;  %v2531_v18 = vunpack.i.h.bf16 %v4836_v24  ;;  %v2530_v50 = vunpack.i.l.bf16 %v4836_v24 }
 0x187   : > { %2693 = vrot.lane.b32.xlu2 %v2692_v60, %s2823_s13  ;;  %v4378_v59 = vsel %vm393_vm5, %v2067_v1, %v2020_v21  ;;  %v4835_v60 = vpack.i.bf16 %v4833_v28, %v4834_v62  ;;  %v2550_v21 = vunpack.i.l.bf16 %v4282_v26 }
 0x188   : > { %2728 = vrot.lane.b32.xlu0 %v2727_v30, %s2822_s12  ;;  %v2574_v13 = vpop.permute.xlu0 %2573  ;;  %v4826_v30 = vpack.i.bf16 %v4824_v10, %v4825_v56  ;;  %v4840_v56 = vld [vmem:[#allocation7_spill] sm:$0xff] }
 0x189   : > { %v2576_v35 = vunpack.i.h.bf16 %v2574_v13  ;;  %v2575_v9 = vunpack.i.l.bf16 %v2574_v13 }
 0x18a   : > { %v2589_v6 = vpop.permute.xlu1 %2588 }
 0x18b   : > { %v1662_v20 = vsel %vm391_vm4, %v1661_v52, %v2576_v35  ;;  %v1655_v7 = vsel %vm391_vm4, %v1654_v25, %v2575_v9  ;;  %v2591_v17 = vunpack.i.h.bf16 %v2589_v6  ;;  %v2590_v23 = vunpack.i.l.bf16 %v2589_v6 }
 0x18c   : > { %v615_v35 = vsel %vm399_vm8, %v4189_v37, %v2530_v50  ;;  %v622_v9 = vsel %vm399_vm8, %v4192_v42, %v2531_v18  ;;  %v4839_v37 = vld [vmem:[#allocation5_spill] sm:$0xff] }
 0x18d   : > { %v616_v52 = vsel %vm401_vm9, %v615_v35, %v2550_v21 }
 0x18f   : > { %2708 = vrot.lane.b32.xlu2 %v4826_v30, %s2817_s7  ;;  %v2594_v4 = vpop.permute.xlu2 %2593 }
 0x190   : > { %2743 = vrot.lane.b32.xlu0 %v4829_v39, %s2822_s12  ;;  %v2596_v61 = vunpack.i.h.bf16 %v2594_v4  ;;  %v2595_v22 = vunpack.i.l.bf16 %v2594_v4 }
 0x191   : > { %v2048_v27 = vpop.permute.xlu0 %2047 }
 0x192   : > { %v4395_v2 = vsel %vm393_vm5, %v2074_v49, %v2048_v27  ;;  %v2604_v43 = vpop.permute.xlu1 %2603 }
 0x193   : > { %v2606_v0 = vunpack.i.h.bf16 %v2604_v43  ;;  %v2605_v57 = vunpack.i.l.bf16 %v2604_v43 }
 0x195   : > { %v4402_v12 = vsel %vm393_vm5, %v1662_v20, %v2606_v0  ;;  %v4405_v19 = vsel %vm393_vm5, %v1655_v7, %v2605_v57  ;;  %v4841_v57 = vld [vmem:[#allocation45_spill] sm:$0xff] }
 0x196   : > { %v1244_v41 = vsel %vm389_vm3, %v4841_v57, %v2596_v61 }
 0x197   : > { %2723 = vrot.lane.b32.xlu2 %v4832_v46, %s2823_s13  ;;  %v2609_v51 = vpop.permute.xlu2 %2608  ;;  %v1237_v46 = vsel %vm389_vm3, %v4842_v16, %v2595_v22  ;;  %s2318_s13 = sshll.u32 %s2872_s19, 4 }
 0x198   : > { %v2611_v1 = vunpack.i.h.bf16 %v2609_v51  ;;  %v2610_v33 = vunpack.i.l.bf16 %v2609_v51  ;;  %s2239_s23 = scalar_lea.hbm %s4635_s4, %s2318_s13 }
 0x199   : > { %v2599_v15 = vpop.permute.xlu0 %2598  ;;  %s2243_s29 = sshll.u32 %s2239_s23, 4  ;;  %s2244_s29 = int_to_ptr.hbm [resolvable:$true] %s2243_s29 }
 0x19a   : > { %v4408_v49 = vsel %vm397_vm7, %v1863_v29, %v2610_v33  ;;  %v4411_v44 = vsel %vm397_vm7, %v1870_v45, %v2611_v1  ;;  %v2601_v48 = vunpack.i.h.bf16 %v2599_v15  ;;  %v2600_v14 = vunpack.i.l.bf16 %v2599_v15  ;;  %v4413_v54 = vpop.permute.xlu1 %2051  ;;  %v4838_v45 = vld [vmem:[#allocation34_spill] sm:$0xff] }
 0x19b   : > { %v1038_v29 = vsel %vm389_vm3, %v4837_v47, %v2591_v17  ;;  %v2076_v21 = vsel %vm395_vm6, %v4395_v2, %v4413_v54 }
 0x19c   : > { %v1445_v40 = vsel %vm393_vm5, %v1444_v36, %v2600_v14  ;;  %v1452_v63 = vsel %vm393_vm5, %v1451_v5, %v2601_v48  ;;  %v1031_v36 = vsel %vm389_vm3, %v4838_v45, %v2590_v23  ;;  %v2551_v5 = vunpack.i.h.bf16 %v4282_v26 }
 0x19d   : > { %v2082_v26 = vrot.slane %v616_v52, 4 }
 0x19e   : > { %v623_v31 = vsel %vm401_vm9, %v622_v9, %v2551_v5 }
 0x19f   : > { %2738 = vrot.lane.b32.xlu2 %v4835_v60, %s2821_s11  ;;  %v2083_v25 = vrot.slane %v623_v31, 4  ;;  %v4447_v42 = vsel %vm2104_vm10, %v4839_v37, %v2082_v26  ;;  %s188_s11 = sand.u32 1, %s2804_s16  }
 0x1a0   : > { %v2614_v11 = vpop.permute.xlu2 %2613  ;;  %s2307_s12 = sshll.u32 %s188_s11, 4  ;;  %s2228_s19 = scalar_lea.sflag [#allocation3], %s188_s11 }
 0x1a1   : > { %v2616_v8 = vunpack.i.h.bf16 %v2614_v11  ;;  %v2615_v53 = vunpack.i.l.bf16 %v2614_v11  ;;  %v2024_v38 = vpop.permute.xlu0 %2023  ;;  %v4451_v30 = vsel %vm2104_vm10, %v4840_v56, %v2083_v25  ;;  %s190_s27 = scalar_lea.vmem [#allocation2], %s2307_s12 }
 0x1a2   : > { %v2624_v13 = vpop.permute.xlu1 %2623  ;;  %v2069_v50 = vsel %vm395_vm6, %v4378_v59, %v2024_v38  ;;  %s2241_s28 = sshll.u32 %s190_s27, 4  ;;  %s2242_s28 = int_to_ptr.vmem [resolvable:$true] %s2241_s28 }
 0x1a3   : > { %v1039_v3 = vsel %vm391_vm4, %v1038_v29, %v2616_v8  ;;  %v1032_v55 = vsel %vm391_vm4, %v1031_v36, %v2615_v53  ;;  %v2626_v6 = vunpack.i.h.bf16 %v2624_v13  ;;  %v2625_v58 = vunpack.i.l.bf16 %v2624_v13 }
 0x1a5   : > { %v4438_v20 = vsel %vm395_vm6, %v1445_v40, %v2625_v58  ;;  %v4441_v7 = vsel %vm395_vm6, %v1452_v63, %v2626_v6 }
 0x1a9   : > { %v4443_v10 = vpop.permute.xlu2 %2628  ;;  %v2619_v39 = vpop.permute.xlu0 %2618 }
 0x1aa   : > { %v2621_v27 = vunpack.i.h.bf16 %v2619_v39  ;;  %v2620_v43 = vunpack.i.l.bf16 %v2619_v39  ;;  %v2028_v0 = vpop.permute.xlu1 %2027  ;;  %v2631_v2 = vunpack.i.h.bf16 %v4443_v10  ;;  %v2630_v54 = vunpack.i.l.bf16 %v4443_v10 }
 0x1ab   : > { %v2070_v47 = vsel %vm397_vm7, %v2069_v50, %v2028_v0 }
 0x1ac   : > { %v4458_v51 = vsel %vm391_vm4, %v1237_v46, %v2620_v43  ;;  %v4461_v1 = vsel %vm391_vm4, %v1244_v41, %v2621_v27  ;;  %v1664_v10 = vsel %vm395_vm6, %v4402_v12, %v2631_v2  ;;  %v1657_v0 = vsel %vm395_vm6, %v4405_v19, %v2630_v54 }
 0x1b1   : > { %v2056_v33 = vpop.permute.xlu2 %2055  ;;  %v2634_v15 = vpop.permute.xlu0 %2633 }
 0x1b2   : > { %v2636_v9 = vunpack.i.h.bf16 %v2634_v15  ;;  %v2635_v6 = vunpack.i.l.bf16 %v2634_v15 }
 0x1b4   : > { %v2639_v48 = vpop.permute.xlu1 %2638  ;;  %v1865_v37 = vsel %vm399_vm8, %v4408_v49, %v2635_v6  ;;  %v1872_v56 = vsel %vm399_vm8, %v4411_v44, %v2636_v9 }
 0x1b5   : > { %v2641_v4 = vunpack.i.h.bf16 %v2639_v48  ;;  %v2640_v14 = vunpack.i.l.bf16 %v2639_v48 }
 0x1b7   : > { %v4464_v17 = vsel %vm393_vm5, %v1032_v55, %v2640_v14  ;;  %v4467_v23 = vsel %vm393_vm5, %v1039_v3, %v2641_v4  ;;  %v2077_v3 = vsel %vm397_vm7, %v2076_v21, %v2056_v33 }
 0x1b9   : > { %v4469_v40 = vpop.permute.xlu2 %2643 }
 0x1ba   : > { %v4471_v63 = vpop.permute.xlu0 %789 }
 0x1bd   : > { %v2654_v28 = vpop.permute.xlu1 %2653 }
 0x1be   : > { %v2656_v26 = vunpack.i.h.bf16 %v2654_v28  ;;  %v2655_v25 = vunpack.i.l.bf16 %v2654_v28 }
 0x1c0   : > { %v1658_v49 = vsel %vm397_vm7, %v1657_v0, %v2655_v25  ;;  %v1665_v41 = vsel %vm397_vm7, %v1664_v10, %v2656_v26 }
 0x1c1   : > { %v2659_v62 = vpop.permute.xlu2 %2658 }
 0x1c2   : > { %v4473_v60 = vpop.permute.xlu0 %2648  ;;  %v2661_v58 = vunpack.i.h.bf16 %v2659_v62  ;;  %v2660_v52 = vunpack.i.l.bf16 %v2659_v62 }
 0x1c3   : > { %v2650_v50 = vunpack.i.l.bf16 %v4473_v60 }
 0x1c4   : > { %v1866_v27 = vsel %vm401_vm9, %v1865_v37, %v2660_v52  ;;  %v1873_v43 = vsel %vm401_vm9, %v1872_v56, %v2661_v58 }
 0x1c5   : > { %v2060_v11 = vpop.permute.xlu1 %2059  ;;  %v2100_v33 = vrot.slane %v1866_v27, 4  ;;  %v2101_v48 = vrot.slane %v1873_v43, 4 }
 0x1c6   : > { %v2078_v55 = vsel %vm399_vm8, %v2077_v3, %v2060_v11 }
 0x1c9   : > { %v4475_v8 = vpop.permute.xlu2 %793 }
 0x1ca   : > { %v2032_v53 = vpop.permute.xlu0 %2031 }
 0x1cb   : > { %v2071_v45 = vsel %vm399_vm8, %v2070_v47, %v2032_v53  ;;  %v2651_v53 = vunpack.i.h.bf16 %v4473_v60 }
 0x1cd   : > { %v4477_v24 = vpop.permute.xlu1 %2668  ;;  %v1454_v60 = vsel %vm397_vm7, %v4441_v7, %v2651_v53 }
 0x1d1   : > { %v4479_v18 = vpop.permute.xlu2 %2673 }
 0x1d2   : > { %v4484_v29 = vpop.permute.xlu0 %2663  ;;  %v2676_v47 = vunpack.i.h.bf16 %v4479_v18 }
 0x1d4   : > { %v1455_v6 = vsel %vm399_vm8, %v1454_v60, %v2676_v47 }
 0x1d5   : > { %v2036_v36 = vpop.permute.xlu1 %2035 }
 0x1d6   : > { %v2072_v5 = vsel %vm401_vm9, %v2071_v45, %v2036_v36  ;;  %v2675_v45 = vunpack.i.l.bf16 %v4479_v18  ;;  %v2646_v36 = vunpack.i.h.bf16 %v4469_v40 }
 0x1d7   : > { %2309 = vmatpush.msk.msra.mxu0 %vm2104_vm10, %v2072_v5  ;;  %v2645_v5 = vunpack.i.l.bf16 %v4469_v40 }
 0x1d9   : > { %v2064_v59 = vpop.permute.xlu2 %2063  ;;  %v1239_v52 = vsel %vm393_vm5, %v4458_v51, %v2645_v5 }
 0x1da   : > { %v2079_v38 = vsel %vm401_vm9, %v2078_v55, %v2064_v59  ;;  %v2679_v13 = vpop.permute.xlu0 %2678  ;;  %v2671_v55 = vunpack.i.h.bf16 %v4477_v24  ;;  %v2670_v59 = vunpack.i.l.bf16 %v4477_v24  ;;  %v1246_v24 = vsel %vm393_vm5, %v4461_v1, %v2646_v36 }
 0x1db   : > { %2311 = vmatpush.msk.msra.mxu1 %vm2104_vm10, %v2079_v38  ;;  %v2681_v61 = vunpack.i.h.bf16 %v2679_v13  ;;  %v2680_v22 = vunpack.i.l.bf16 %v2679_v13  ;;  %v1447_v38 = vsel %vm397_vm7, %v4438_v20, %v2650_v50 }
 0x1dc   : > { %v1448_v18 = vsel %vm399_vm8, %v1447_v38, %v2675_v45  ;;  %v1240_v7 = vsel %vm395_vm6, %v1239_v52, %v2670_v59 }
 0x1dd   : > { %v4496_v35 = vpop.permute.xlu1 %2688  ;;  %v1659_v46 = vsel %vm399_vm8, %v1658_v49, %v2680_v22  ;;  %v1666_v15 = vsel %vm399_vm8, %v1665_v41, %v2681_v61  ;;  %v2666_v41 = vunpack.i.h.bf16 %v4484_v29 }
 0x1e1   : > { %v2694_v31 = vpop.permute.xlu2 %2693 }
 0x1e2   : > { %v4504_v39 = vpop.permute.xlu0 %2683  ;;  %v2696_v13 = vunpack.i.h.bf16 %v2694_v31  ;;  %v2695_v9 = vunpack.i.l.bf16 %v2694_v31  ;;  %v1247_v31 = vsel %vm395_vm6, %v1246_v24, %v2671_v55 }
 0x1e4   : > { %v1241_v37 = vsel %vm397_vm7, %v1240_v7, %v2695_v9  ;;  %v1248_v56 = vsel %vm397_vm7, %v1247_v31, %v2696_v13 }
 0x1e5   : > { %v2704_v57 = vpop.permute.xlu1 %2703 }
 0x1e6   : > { %v2706_v44 = vunpack.i.h.bf16 %v2704_v57  ;;  %v2705_v16 = vunpack.i.l.bf16 %v2704_v57 }
 0x1e8   : > { %v1660_v4 = vsel %vm401_vm9, %v1659_v46, %v2705_v16  ;;  %v1667_v12 = vsel %vm401_vm9, %v1666_v15, %v2706_v44  ;;  %v2665_v44 = vunpack.i.l.bf16 %v4484_v29  ;;  %v823_v46 = vsel %vm389_vm3, %v4112_v34, %v4471_v63 }
 0x1e9   : > { %v2111_v14 = vsel %vm2104_vm10, %v1660_v4, %v2100_v33  ;;  %v2112_v19 = vsel %vm2104_vm10, %v1667_v12, %v2101_v48  ;;  %v4520_v28 = vpop.permute.xlu2 %2708  ;;  %v2691_v33 = vunpack.i.h.bf16 %v4496_v35  ;;  %v2690_v15 = vunpack.i.l.bf16 %v4496_v35 }
 0x1ea   : > { %2136 = vmatpush.msra.mxu0 %v2111_v14  ;;  %2156 = vmatpush.msra.mxu1 %v2112_v19  ;;  %v2699_v62 = vpop.permute.xlu0 %2698  ;;  %v824_v48 = vsel %vm391_vm4, %v823_v46, %v4475_v8  ;;  %v2686_v14 = vunpack.i.h.bf16 %v4504_v39  ;;  %v2685_v19 = vunpack.i.l.bf16 %v4504_v39  ;;  %v1034_v53 = vsel %vm395_vm6, %v4464_v17, %v2665_v44 }
 0x1eb   : > { %v2701_v21 = vunpack.i.h.bf16 %v2699_v62  ;;  %v2700_v3 = vunpack.i.l.bf16 %v2699_v62  ;;  %v1041_v34 = vsel %vm395_vm6, %v4467_v23, %v2666_v41  ;;  %v2711_v63 = vunpack.i.h.bf16 %v4520_v28 }
 0x1ec   : > { %v2710_v35 = vunpack.i.l.bf16 %v4520_v28  ;;  %v1035_v8 = vsel %vm397_vm7, %v1034_v53, %v2690_v15  ;;  %v1042_v50 = vsel %vm397_vm7, %v1041_v34, %v2691_v33  ;;  %v818_v17 = vsel %vm393_vm5, %v4251_v32, %v2685_v19 }
 0x1ed   : > { %v2719_v11 = vpop.permute.xlu1 %2718  ;;  %v1449_v20 = vsel %vm401_vm9, %v1448_v18, %v2700_v3  ;;  %v1456_v54 = vsel %vm401_vm9, %v1455_v6, %v2701_v21  ;;  %v825_v23 = vsel %vm393_vm5, %v824_v48, %v2686_v14 }
 0x1ee   : > { %v2721_v58 = vunpack.i.h.bf16 %v2719_v11  ;;  %v2720_v40 = vunpack.i.l.bf16 %v2719_v11  ;;  %v2094_v1 = vrot.slane %v1449_v20, 4  ;;  %v2095_v43 = vrot.slane %v1456_v54, 4  ;;  %v2113_v54 = vld [vmem:[%s4632_s1] sm:$0xff] }
 0x1ef   : > { %v826_v55 = vsel %vm395_vm6, %v825_v23, %v2711_v63  ;;  %v819_v59 = vsel %vm395_vm6, %v818_v17, %v2710_v35 }
 0x1f0   : > { %v1242_v22 = vsel %vm399_vm8, %v1241_v37, %v2720_v40  ;;  %v1249_v27 = vsel %vm399_vm8, %v1248_v56, %v2721_v58 }
 0x1f1   : > { %v2724_v26 = vpop.permute.xlu2 %2723 }
 0x1f2   : > { %v2714_v2 = vpop.permute.xlu0 %2713  ;;  %v2726_v47 = vunpack.i.h.bf16 %v2724_v26  ;;  %v2725_v45 = vunpack.i.l.bf16 %v2724_v26 }
 0x1f3   : > { %v2716_v4 = vunpack.i.h.bf16 %v2714_v2  ;;  %v2715_v12 = vunpack.i.l.bf16 %v2714_v2 }
 0x1f4   : > { %v820_v60 = vsel %vm397_vm7, %v819_v59, %v2725_v45  ;;  %v827_v13 = vsel %vm397_vm7, %v826_v55, %v2726_v47 }
 0x1f5   : > { %v2734_v25 = vpop.permute.xlu1 %2733  ;;  %v1036_v39 = vsel %vm399_vm8, %v1035_v8, %v2715_v12  ;;  %v1043_v36 = vsel %vm399_vm8, %v1042_v50, %v2716_v4 }
 0x1f6   : > { %v2736_v61 = vunpack.i.h.bf16 %v2734_v25  ;;  %v2735_v51 = vunpack.i.l.bf16 %v2734_v25 }
 0x1f8   : > { %v1243_v10 = vsel %vm401_vm9, %v1242_v22, %v2735_v51  ;;  %v1250_v0 = vsel %vm401_vm9, %v1249_v27, %v2736_v61  ;;  %v2825_v61 = vmov 0   ;;  %v2209_v51 = vld [vmem:[%s4633_s2] sm:$0xff] }
 0x1f9   : > { %v2109_v57 = vsel %vm2104_vm10, %v1243_v10, %v2094_v1  ;;  %v2110_v49 = vsel %vm2104_vm10, %v1250_v0, %v2095_v43  ;;  %v2739_v62 = vpop.permute.xlu2 %2738  ;;  %2747 = vset.pattern.permute.xlu0 %v2825_v61 }
 0x1fa   : > { %2137 = vmatpush.msra.mxu0 %v2109_v57  ;;  %2157 = vmatpush.msra.mxu1 %v2110_v49  ;;  %v2729_v16 = vpop.permute.xlu0 %2728  ;;  %v2741_v5 = vunpack.i.h.bf16 %v2739_v62  ;;  %v2740_v21 = vunpack.i.l.bf16 %v2739_v62 }
 0x1fb   : > { %v2731_v29 = vunpack.i.h.bf16 %v2729_v16  ;;  %v2730_v11 = vunpack.i.l.bf16 %v2729_v16  ;;  %2212 = vperm.xlu0 %2747, %v2209_v51  }
 0x1fc   : > { %v821_v6 = vsel %vm399_vm8, %v820_v60, %v2740_v21  ;;  %v828_v58 = vsel %vm399_vm8, %v827_v13, %v2741_v5 }
 0x1fd   : > { %v1037_v3 = vsel %vm401_vm9, %v1036_v39, %v2730_v11  ;;  %v1044_v28 = vsel %vm401_vm9, %v1043_v36, %v2731_v29 }
 0x1fe   : > { %v2088_v32 = vrot.slane %v1037_v3, 4  ;;  %v2089_v40 = vrot.slane %v1044_v28, 4 }
 0x202   : > { %v2744_v38 = vpop.permute.xlu0 %2743 }
 0x203   : > { %v2746_v9 = vunpack.i.h.bf16 %v2744_v38  ;;  %v2745_v18 = vunpack.i.l.bf16 %v2744_v38 }
 0x205   : > { %v822_v52 = vsel %vm401_vm9, %v821_v6, %v2745_v18  ;;  %v829_v24 = vsel %vm401_vm9, %v828_v58, %v2746_v9 }
 0x206   : > { %v2107_v2 = vsel %vm2104_vm10, %v822_v52, %v2088_v32  ;;  %v2108_v20 = vsel %vm2104_vm10, %v829_v24, %v2089_v40 }
 0x207   : > { %2138 = vmatpush.msra.mxu0 %v2107_v2  ;;  %2158 = vmatpush.msra.mxu1 %v2108_v20 }
 0x209   : > { %2139 = vmatpush.msra.mxu0 %v4447_v42  ;;  %2159 = vmatpush.msra.mxu1 %v4451_v30  ;;  %v2217_v42 = vld [vmem:[%s4634_s3] sm:$0xff] }
 0x20a   : > { %2310 = vmatmul.msk.f32.vlgmr.msra.gmra.mxu0 %vm2114_vm11, %v2113_v54  ;;  %2312 = vmatmul.msk.f32.vlgmr.msra.gmra.mxu1 %vm2114_vm11, %v2113_v54 }
 0x20b   : > { %2220 = vperm.xlu0 %2747, %v2217_v42  }
 0x26d   : > { %v2213_v11 = vpop.permute.xlu0 %2212 }
 0x27d   : > { %v2221_v39 = vpop.permute.xlu0 %2220 }
 0x287   : > { %v2141_v7 = vpop.f32.mrf.mxu0  ;;  %v2161_v31 = vpop.f32.mrf.mxu1 }
 0x288   : > { %v2175_v26 = vmul.f32 %v2141_v7, %v2141_v7  ;;  %v2176_v25 = vmul.f32 %v2161_v31, %v2161_v31  ;;  %v2164_v37 = vadd.f32 %v2161_v31, %v2141_v7 }
 0x28a   : > { %2165 = vadd.xlane.f32.xlu1 %v2164_v37  ;;  %v2177_v56 = vadd.f32 %v2176_v25, %v2175_v26 }
 0x28c   : > { %2178 = vadd.xlane.f32.xlu2 %v2177_v56 }
 0x2fd   : > { %v2166_v30 = vpop.xlane.xlu1 %2165 }
 0x2fe   : > { %v2167_v22 = vrot.slane %v2166_v30, 4 }
 0x2ff   : > { %v2179_v1 = vpop.xlane.xlu2 %2178 }
 0x300   : > { %v2168_v27 = vadd.f32 %v2167_v22, %v2166_v30  ;;  %v2180_v43 = vrot.slane %v2179_v1, 4 }
 0x302   : > { %v2169_v10 = vrot.slane %v2168_v27, 2  ;;  %v2181_v0 = vadd.f32 %v2180_v43, %v2179_v1 }
 0x304   : > { %v2182_v57 = vrot.slane %v2181_v0, 2  ;;  %v2170_v49 = vadd.f32 %v2169_v10, %v2168_v27 }
 0x306   : > { %v2183_v41 = vadd.f32 %v2182_v57, %v2181_v0  ;;  %v2171_v44 = vrot.slane %v2170_v49, 1 }
 0x308   : > { %v2172_v16 = vadd.f32 %v2171_v44, %v2170_v49  ;;  %v2184_v46 = vrot.slane %v2183_v41, 1 }
 0x30a   : > { %2320 = vpush %v2172_v16  ;;  %v2185_v33 = vadd.f32 %v2184_v46, %v2183_v41 }
 0x30c   : > { %2322 = vpush %v2185_v33 }
 0x33b   : > { %s2321_s30 = spop %2320 }
 0x33c   : > { %s2174_s5 = smul.f32 0.00048828125, %s2321_s30  ;;  %s2764_s30 = sshra.s32 %s2244_s29, 4  ;;  %s2765_s30 = int_to_ptr.hbm [resolvable:$true] %s2764_s30 }
 0x33d   : > { %s2323_s6 = spop %2322  ;;  %p2771_p0 = scmp.lt.s32.totalorder %s2765_s30, %s4635_s4 }
 0x33e   : > { %s2188_s7 = smul.f32 %s2174_s5, %s2174_s5  ;;  %v2203_v53 = vstv %s2174_s5  ;;  %s2766_s5 = scalar_lea.hbm %s2765_s30, 16 }
 0x33f   : > { %s2187_s8 = smul.f32 0.00048828125, %s2323_s6  ;;  %v2204_v34 = vsub.f32 %v2141_v7, %v2203_v53  ;;  %v2205_v63 = vsub.f32 %v2161_v31, %v2203_v53  ;;  %p2767_p11 = scmp.ne.s32.totalorder %s2765_s30, %s2766_s5 }
 0x341   : > { %s2189_s9 = ssub.f32 %s2187_s8, %s2188_s7  ;;  %p2768_p12 = pnand %p2767_p11, %p2889_p5 }
 0x342   : > { %s2770_s8 = scalar_lea.hbm %s4635_s4, 32 }
 0x343   : > { %s2190_s10 = sadd.f32 1e-05, %s2189_s9  ;;  %p2769_p13 = pneg %p2768_p12 }
 0x344   : > { %p2772_p1 = scmp.lt.s32.totalorder %s2770_s8, %s2766_s5 }
 0x345   : > { %v2191_v15 = vstv %s2190_s10 }
 0x346   : > { %2748 = vrsqrt.f32 %v2191_v15  ;;  %vm2198_vm13 = vweird.f32 %v2191_v15  ;;  %p2773_p2 = por %p2772_p1, %p2771_p0 }
 0x348   : > { %p2774_p3 = pnand %p2773_p2, %p2769_p13 }
 0x34c   : > { %v2749_v48 = vpop.eup %2748 }
 0x34d   : > { %v2193_v4 = vmul.f32 %v2749_v48, %v2191_v15  ;;  %vm2199_vm12 = vweird.f32 %v2749_v48 }
 0x34e   : > { %vm2200_vm14 = vmor %vm2198_vm13, %vm2199_vm12 }
 0x34f   : > { %v2194_v12 = vmul.f32 %v2749_v48, %v2193_v4 }
 0x351   : > { %v2195_v14 = vmul.f32 0.5, %v2194_v12 }
 0x353   : > { %v2196_v19 = vsub.f32 1.5, %v2195_v14 }
 0x355   : > { %v2197_v62 = vmul.f32 %v2749_v48, %v2196_v19 }
 0x357   : > { %v2201_v29 = vsel %vm2200_vm14, %v2749_v48, %v2197_v62 }
 0x358   : > { %2324 = vpush %v2201_v29 }
 0x389   : > { %s2325_s14 = spop %2324 }
 0x38a   : > { %v2206_v35 = vstv %s2325_s14 }
 0x38b   : > { %v2207_v8 = vmul.f32 %v2206_v35, %v2204_v34  ;;  %v2208_v50 = vmul.f32 %v2206_v35, %v2205_v63 }
 0x38d   : > { %v2215_v47 = vmul.f32 %v2213_v11, %v2207_v8  ;;  %v2216_v45 = vmul.f32 %v2213_v11, %v2208_v50 }
 0x38f   : > { %v2223_v36 = vadd.f32 %v2221_v39, %v2215_v47  ;;  %v2224_v5 = vadd.f32 %v2221_v39, %v2216_v45 }
 0x391   : > { %2225 = vst [vmem:[%s190_s27] sm:$0xff] %v2223_v36 }
 0x392   : > { %2226 = vst [vmem:[%s190_s27 + $0x8] sm:$0xff] %v2224_v5 }
 0x393   : > { %2777 = shalt.err (!%p2774_p3)
}
 0x394   : > { %2326 = dma.vmem_to_hbm [thread:$0]  (%p2889_p5), %s2242_s28, 256, %s2244_s29, %s2228_s19  }
 0x395 PF: > { %p2332_p4 = scmp.ge.s32.totalorder %s2812_s18, 2  ;;  %s2255_s11 = sand.u32 1, %s2800_s15  }
 0x396   : > { %s2256_s12 = scalar_lea.sflag [#allocation3], %s2255_s11 }
 0x397   : > { %p2329_p7 = pnand %p2332_p4, %p2893_p6 }
 0x399   : > { %p2330_p8 = pneg %p2329_p7 }
 0x39b   : > { %2795 = dma.done.wait (%p2330_p8), %s2256_s12, 256  }
 0x39c   : > { %2797 = vsyncadd (%p2330_p8), %s2256_s12, 4294967040  ;;  %p14_p9 = scmp.ge.s32.totalorder %s2876_s21, 4   ;;  %s4843_s15 = smov %s2804_s16 }
 0x39d   : > { %s4844_s16 = smov %s2808_s17  ;;  %s4845_s17 = smov %s2887_s24 }
 0x39e   : > { %s4846_s18 = smov %s2876_s21  ;;  %16 = sbr.rel (!%p14_p9) target bundleno = 3 (0x3), region = 71 }
 0x3a3   :  { %2262 = vsyncpa [#allocation3], 1 }
 0x3a4   :  { %2264 = vsyncpa [#allocation3 + $0x1], 1 }

</bundles_post_ra>
